<compile_context>
chip_gen: v6e
topology: v6e:2x2x1
jax: 0.10.0
libtpu: 0.0.40
codegen_flags: <defaults>
</compile_context>

<pallas_src>
import jax
import jax.numpy as jnp
from jax.experimental import pallas as pl
from jax.experimental.pallas import tpu as pltpu

DROPOUT_P = 0.5
BN_EPS = 1e-5
# keep element iff rbits >= threshold  ->  P(keep) = 1 - p   (unsigned compare)
_DROP_THRESHOLD = min(int(DROPOUT_P * (1 << 32)), (1 << 32) - 1)


def encoding_kernel(adj_ref, x_ref, w_ref, b_ref, gamma_ref, beta_ref,
                    rbits_ref, o_ref, h_acc):
    """One (j = E-column tile, k = adjacency K tile) grid step.

    Grid axis 0 (j, "parallel") : independent emb_dim column tiles.
    Grid axis 1 (k, "arbitrary"): streams the N x N adjacency along its
                                  contraction axis into an f32 accumulator.
    The epilogue runs once per column tile on the final K step while the full
    node dimension is resident, keeping per-feature BN batch stats exact.
    """
    k = pl.program_id(1)

    @pl.when(k == 0)
    def _():
        h_acc[...] = jnp.zeros_like(h_acc)

    # Mean-neighbor aggregation: h += adj[:, k-block] @ x[k-block, :]
    # bf16 operands on the MXU, f32 accumulation.
    h_acc[...] += jnp.dot(adj_ref[...], x_ref[...],
                          preferred_element_type=jnp.float32)

    @pl.when(k == pl.num_programs(1) - 1)
    def _():
        # ---- Linear: h @ W + b   (bf16 MXU operands, f32 accumulate)
        z = jnp.dot(h_acc[...].astype(jnp.bfloat16), w_ref[...],
                    preferred_element_type=jnp.float32) + b_ref[...]

        # ---- BatchNorm1d, training mode (batch statistics, biased variance)
        mean = jnp.mean(z, axis=0, keepdims=True)
        var = jnp.mean(jnp.square(z - mean), axis=0, keepdims=True)
        z = (z - mean) * jax.lax.rsqrt(var + BN_EPS)
        z = z * gamma_ref[...] + beta_ref[...]

        # ---- Tanh (EUP), f32
        z = jnp.tanh(z)

        # ---- Dropout(p): keep w.p. 1-p, scale 1/(1-p).  Bits generated on the
        # host and streamed per column tile -> distinct mask per tile/call.
        keep = rbits_ref[...] >= jnp.uint32(_DROP_THRESHOLD)
        z = jnp.where(keep, z * jnp.float32(1.0 / (1.0 - DROPOUT_P)),
                      jnp.float32(0.0))

        o_ref[...] = z.astype(o_ref.dtype)


def encoding_layer_forward(dropout_key, adj_norm, x, w, b, gamma, beta,
                           *, tk=128, te=128):
    N, F = x.shape
    E = w.shape[1]
    assert adj_norm.shape == (N, N)
    assert N % tk == 0 and E % te == 0

    # bf16 MXU operands (halves adj/x/W HBM + VMEM traffic); f32 accumulate in
    # kernel.  Epilogue params stay f32.
    adj_bf16 = adj_norm.astype(jnp.bfloat16)
    x_bf16 = x.astype(jnp.bfloat16)
    w_bf16 = w.astype(jnp.bfloat16)

    # Host-side dropout randomness (no TPU-only PRNG primitives in-kernel).
    rbits = jax.random.bits(dropout_key, (N, E), dtype=jnp.uint32)

    grid = (E // te, N // tk)  # (parallel column tiles, arbitrary K tiles)

    cost = pl.CostEstimate(
        flops=2 * N * N * F + 2 * N * F * E,
        transcendentals=N * E,
        bytes_accessed=(N * N * 2 + N * F * 2 + F * E * 2
                        + 3 * E * 4 + N * E * 4 + N * E * 4),
    )

    return pl.pallas_call(
        encoding_kernel,
        out_shape=jax.ShapeDtypeStruct((N, E), jnp.float32),
        grid_spec=pltpu.PrefetchScalarGridSpec(
            num_scalar_prefetch=0,
            grid=grid,
            in_specs=[
                pl.BlockSpec((N, tk), lambda j, k: (0, k)),   # adj  (stream K)
                pl.BlockSpec((tk, F), lambda j, k: (k, 0)),   # x    (stream K)
                pl.BlockSpec((F, te), lambda j, k: (0, j)),   # W    (per E tile)
                pl.BlockSpec((1, te), lambda j, k: (0, j)),   # bias
                pl.BlockSpec((1, te), lambda j, k: (0, j)),   # gamma
                pl.BlockSpec((1, te), lambda j, k: (0, j)),   # beta
                pl.BlockSpec((N, te), lambda j, k: (0, j)),   # dropout bits
            ],
            out_specs=pl.BlockSpec((N, te), lambda j, k: (0, j)),
            scratch_shapes=[pltpu.VMEM((N, F), jnp.float32)],  # h accumulator
        ),
        compiler_params=pltpu.CompilerParams(
            dimension_semantics=("parallel", "arbitrary")),
        cost_estimate=cost,
    )(adj_bf16, x_bf16, w_bf16, b, gamma, beta, rbits)


if __name__ == "__main__":
    # Lane-dense small shapes: emb_input_dim = emb_dim = 128 (one full vreg of
    # lanes); N = 256 nodes so the adjacency K axis is actually tiled (2 steps).
    N, F, E = 256, 128, 128

    key = jax.random.PRNGKey(0)
    k_x, k_adj, k_w, k_b, k_drop = jax.random.split(key, 5)

    # node features
    x = jax.random.normal(k_x, (N, F), dtype=jnp.float32)

    # random undirected graph -> mean aggregator matrix (self-loop + row-normalize)
    adj = (jax.random.uniform(k_adj, (N, N)) < 0.05).astype(jnp.float32)
    adj = jnp.maximum(adj, adj.T)
    adj = adj + jnp.eye(N, dtype=jnp.float32)
    adj_norm = adj / jnp.sum(adj, axis=1, keepdims=True)

    # fc parameters (deterministic synthetic init; torch-Linear-like scale)
    limit = 1.0 / jnp.sqrt(jnp.float32(F))
    w = jax.random.uniform(k_w, (F, E), minval=-limit, maxval=limit,
                           dtype=jnp.float32)
    b = jax.random.uniform(k_b, (1, E), minval=-limit, maxval=limit,
                           dtype=jnp.float32)
    gamma = jnp.ones((1, E), dtype=jnp.float32)   # BatchNorm1d weight
    beta = jnp.zeros((1, E), dtype=jnp.float32)   # BatchNorm1d bias

    emb = encoding_layer_forward(k_drop, adj_norm, x, w, b, gamma, beta)
    emb = jax.block_until_ready(emb)

    assert emb.shape == (N, E)
    assert bool(jnp.all(jnp.isfinite(emb)))
    # dropped entries are exactly zero; kept entries are (1/(1-p))-scaled tanh
    scale = 1.0 / (1.0 - DROPOUT_P)
    assert bool(jnp.all(jnp.abs(emb) <= scale + 1e-5))
    n_zero = int(jnp.sum(emb == 0.0))
    assert 0 < n_zero < emb.size          # some dropped, some kept

    print("KERNEL_OK")
</pallas_src>

<mosaic_0001>
module attributes {stable_mosaic.version = 11 : i64} {
  func.func @encoding_kernel(%arg0: i32, %arg1: i32, %arg2: memref<256x128xbf16, #tpu.memory_space<vmem>>, %arg3: memref<128x128xbf16, #tpu.memory_space<vmem>>, %arg4: memref<128x128xbf16, #tpu.memory_space<vmem>>, %arg5: memref<1x128xf32, #tpu.memory_space<vmem>>, %arg6: memref<1x128xf32, #tpu.memory_space<vmem>>, %arg7: memref<1x128xf32, #tpu.memory_space<vmem>>, %arg8: memref<256x128xi32, #tpu.memory_space<vmem>>, %arg9: memref<256x128xf32, #tpu.memory_space<vmem>>, %arg10: memref<256x128xf32, #tpu.memory_space<vmem>>) attributes {dimension_semantics = [#tpu.dimension_semantics<parallel>, #tpu.dimension_semantics<arbitrary>], iteration_bounds = array<i64: 1, 2>, scalar_prefetch = 0 : i64, scratch_operands = 1 : i64, tpu.core_type = #tpu.core_type<tc>, window_params = [{transform_indices = @transform_0, window_bounds = array<i64: 256, 128>}, {transform_indices = @transform_1, window_bounds = array<i64: 128, 128>}, {transform_indices = @transform_2, window_bounds = array<i64: 128, 128>}, {transform_indices = @transform_3, window_bounds = array<i64: 1, 128>}, {transform_indices = @transform_4, window_bounds = array<i64: 1, 128>}, {transform_indices = @transform_5, window_bounds = array<i64: 1, 128>}, {transform_indices = @transform_6, window_bounds = array<i64: 256, 128>}, {transform_indices = @transform_7, window_bounds = array<i64: 256, 128>}]} {
    %c0_i32 = arith.constant 0 : i32
    %0 = arith.cmpi eq, %arg1, %c0_i32 : i32
    %1 = arith.extui %0 : i1 to i32
    %c0_i32_0 = arith.constant 0 : i32
    %2 = arith.cmpi ne, %1, %c0_i32_0 : i32
    scf.if %2 {
      %cst_9 = arith.constant 0.000000e+00 : f32
      %12 = vector.broadcast %cst_9 : f32 to vector<256x128xf32>
      %c0_10 = arith.constant 0 : index
      %c0_11 = arith.constant 0 : index
      %13 = vector.load %arg10[%c0_10, %c0_11] : memref<256x128xf32, #tpu.memory_space<vmem>>, vector<256x128xf32>
      tpu.vector_store %arg10[%c0_10, %c0_11], %12 {strides = array<i32>} : memref<256x128xf32, #tpu.memory_space<vmem>>, vector<256x128xf32>,
    } else {
    }
    %c0 = arith.constant 0 : index
    %c0_1 = arith.constant 0 : index
    %3 = vector.load %arg10[%c0, %c0_1] : memref<256x128xf32, #tpu.memory_space<vmem>>, vector<256x128xf32>
    %c0_2 = arith.constant 0 : index
    %c0_3 = arith.constant 0 : index
    %4 = vector.load %arg2[%c0_2, %c0_3] : memref<256x128xbf16, #tpu.memory_space<vmem>>, vector<256x128xbf16>
    %c0_4 = arith.constant 0 : index
    %c0_5 = arith.constant 0 : index
    %5 = vector.load %arg3[%c0_4, %c0_5] : memref<128x128xbf16, #tpu.memory_space<vmem>>, vector<128x128xbf16>
    %cst = arith.constant dense<0.000000e+00> : vector<256x128xf32>
    %6 = tpu.matmul %4, %5, %cst {dimension_numbers = #tpu.dot_dimension_numbers<[1], [0], [0], [1], [0, 0, 1, 1], [], []>} : vector<256x128xbf16>, vector<128x128xbf16>, vector<256x128xf32> -> vector<256x128xf32>
    %7 = arith.addf %3, %6 : vector<256x128xf32>
    %c0_6 = arith.constant 0 : index
    %c0_7 = arith.constant 0 : index
    %8 = vector.load %arg10[%c0_6, %c0_7] : memref<256x128xf32, #tpu.memory_space<vmem>>, vector<256x128xf32>
    tpu.vector_store %arg10[%c0_6, %c0_7], %7 {strides = array<i32>} : memref<256x128xf32, #tpu.memory_space<vmem>>, vector<256x128xf32>,
    %c1_i32 = arith.constant 1 : i32
    %9 = arith.cmpi eq, %arg1, %c1_i32 : i32
    %10 = arith.extui %9 : i1 to i32
    %c0_i32_8 = arith.constant 0 : i32
    %11 = arith.cmpi ne, %10, %c0_i32_8 : i32
    scf.if %11 {
      %c0_9 = arith.constant 0 : index
      %c0_10 = arith.constant 0 : index
      %12 = vector.load %arg10[%c0_9, %c0_10] : memref<256x128xf32, #tpu.memory_space<vmem>>, vector<256x128xf32>
      %13 = arith.truncf %12 : vector<256x128xf32> to vector<256x128xbf16>
      %c0_11 = arith.constant 0 : index
      %c0_12 = arith.constant 0 : index
      %14 = vector.load %arg4[%c0_11, %c0_12] : memref<128x128xbf16, #tpu.memory_space<vmem>>, vector<128x128xbf16>
      %cst_13 = arith.constant dense<0.000000e+00> : vector<256x128xf32>
      %15 = tpu.matmul %13, %14, %cst_13 {dimension_numbers = #tpu.dot_dimension_numbers<[1], [0], [0], [1], [0, 0, 1, 1], [], []>} : vector<256x128xbf16>, vector<128x128xbf16>, vector<256x128xf32> -> vector<256x128xf32>
      %c0_14 = arith.constant 0 : index
      %c0_15 = arith.constant 0 : index
      %16 = vector.load %arg5[%c0_14, %c0_15] : memref<1x128xf32, #tpu.memory_space<vmem>>, vector<1x128xf32>
      %17 = vector.broadcast %16 : vector<1x128xf32> to vector<256x128xf32>
      %18 = arith.addf %15, %17 : vector<256x128xf32>
      %cst_16 = arith.constant dense<0.000000e+00> : vector<128xf32>
      %19 = vector.multi_reduction <add>, %18, %cst_16 [0] : vector<256x128xf32> to vector<128xf32>
      %20 = vector.shape_cast %19 : vector<128xf32> to vector<1x128xf32>
      %cst_17 = arith.constant 2.560000e+02 : f32
      %21 = vector.broadcast %cst_17 : f32 to vector<1x128xf32>
      %22 = arith.divf %20, %21 : vector<1x128xf32>
      %23 = vector.broadcast %22 : vector<1x128xf32> to vector<256x128xf32>
      %24 = arith.subf %18, %23 : vector<256x128xf32>
      %25 = arith.mulf %24, %24 : vector<256x128xf32>
      %cst_18 = arith.constant dense<0.000000e+00> : vector<128xf32>
      %26 = vector.multi_reduction <add>, %25, %cst_18 [0] : vector<256x128xf32> to vector<128xf32>
      %27 = vector.shape_cast %26 : vector<128xf32> to vector<1x128xf32>
      %cst_19 = arith.constant 2.560000e+02 : f32
      %28 = vector.broadcast %cst_19 : f32 to vector<1x128xf32>
      %29 = arith.divf %27, %28 : vector<1x128xf32>
      %30 = vector.broadcast %22 : vector<1x128xf32> to vector<256x128xf32>
      %31 = arith.subf %18, %30 : vector<256x128xf32>
      %cst_20 = arith.constant 9.99999974E-6 : f32
      %32 = vector.broadcast %cst_20 : f32 to vector<1x128xf32>
      %33 = arith.addf %29, %32 : vector<1x128xf32>
      %34 = math.rsqrt %33 : vector<1x128xf32>
      %35 = vector.broadcast %34 : vector<1x128xf32> to vector<256x128xf32>
      %36 = arith.mulf %31, %35 : vector<256x128xf32>
      %c0_21 = arith.constant 0 : index
      %c0_22 = arith.constant 0 : index
      %37 = vector.load %arg6[%c0_21, %c0_22] : memref<1x128xf32, #tpu.memory_space<vmem>>, vector<1x128xf32>
      %38 = vector.broadcast %37 : vector<1x128xf32> to vector<256x128xf32>
      %39 = arith.mulf %36, %38 : vector<256x128xf32>
      %c0_23 = arith.constant 0 : index
      %c0_24 = arith.constant 0 : index
      %40 = vector.load %arg7[%c0_23, %c0_24] : memref<1x128xf32, #tpu.memory_space<vmem>>, vector<1x128xf32>
      %41 = vector.broadcast %40 : vector<1x128xf32> to vector<256x128xf32>
      %42 = arith.addf %39, %41 : vector<256x128xf32>
      %43 = math.tanh %42 : vector<256x128xf32>
      %c0_25 = arith.constant 0 : index
      %c0_26 = arith.constant 0 : index
      %44 = vector.load %arg8[%c0_25, %c0_26] : memref<256x128xi32, #tpu.memory_space<vmem>>, vector<256x128xi32>
      %c-2147483648_i32 = arith.constant -2147483648 : i32
      %45 = vector.broadcast %c-2147483648_i32 : i32 to vector<256x128xi32>
      %46 = arith.cmpi uge, %44, %45 : vector<256x128xi32>
      %cst_27 = arith.constant 2.000000e+00 : f32
      %47 = vector.broadcast %cst_27 : f32 to vector<256x128xf32>
      %48 = arith.mulf %43, %47 : vector<256x128xf32>
      %cst_28 = arith.constant 0.000000e+00 : f32
      %49 = vector.broadcast %cst_28 : f32 to vector<256x128xf32>
      %50 = arith.select %46, %48, %49 : vector<256x128xi1>, vector<256x128xf32>
      %c0_29 = arith.constant 0 : index
      %c0_30 = arith.constant 0 : index
      %51 = vector.load %arg9[%c0_29, %c0_30] : memref<256x128xf32, #tpu.memory_space<vmem>>, vector<256x128xf32>
      tpu.vector_store %arg9[%c0_29, %c0_30], %50 {strides = array<i32>} : memref<256x128xf32, #tpu.memory_space<vmem>>, vector<256x128xf32>,
    } else {
    }
    return
  }
  func.func @transform_0(%arg0: i32, %arg1: i32) -> (i32, i32) {
    %c0_i32 = arith.constant 0 : i32
    %c0_i32_0 = arith.constant 0 : i32
    return %c0_i32, %arg1 : i32, i32
  }
  func.func @transform_1(%arg0: i32, %arg1: i32) -> (i32, i32) {
    %c0_i32 = arith.constant 0 : i32
    %c0_i32_0 = arith.constant 0 : i32
    return %arg1, %c0_i32 : i32, i32
  }
  func.func @transform_2(%arg0: i32, %arg1: i32) -> (i32, i32) {
    %c0_i32 = arith.constant 0 : i32
    %c0_i32_0 = arith.constant 0 : i32
    return %c0_i32, %arg0 : i32, i32
  }
  func.func @transform_3(%arg0: i32, %arg1: i32) -> (i32, i32) {
    %c0_i32 = arith.constant 0 : i32
    %c0_i32_0 = arith.constant 0 : i32
    return %c0_i32, %arg0 : i32, i32
  }
  func.func @transform_4(%arg0: i32, %arg1: i32) -> (i32, i32) {
    %c0_i32 = arith.constant 0 : i32
    %c0_i32_0 = arith.constant 0 : i32
    return %c0_i32, %arg0 : i32, i32
  }
  func.func @transform_5(%arg0: i32, %arg1: i32) -> (i32, i32) {
    %c0_i32 = arith.constant 0 : i32
    %c0_i32_0 = arith.constant 0 : i32
    return %c0_i32, %arg0 : i32, i32
  }
  func.func @transform_6(%arg0: i32, %arg1: i32) -> (i32, i32) {
    %c0_i32 = arith.constant 0 : i32
    %c0_i32_0 = arith.constant 0 : i32
    return %c0_i32, %arg0 : i32, i32
  }
  func.func @transform_7(%arg0: i32, %arg1: i32) -> (i32, i32) {
    %c0_i32 = arith.constant 0 : i32
    %c0_i32_0 = arith.constant 0 : i32
    return %c0_i32, %arg0 : i32, i32
  }
}

</mosaic_0001>

<bundles_post_ra>
// kernel: tpu_custom_call.1
= control target key start
LH: loop header
LB: loop body
LE: loop exit
PB: predicated region body
PF: predicated region fallthrough
CT: control target
= control target key end

     0   :  { %s3283_s0 = inlined_call_operand.hbm [shape: bf16[256,256], index: 0, kind: input, shape index: {}]   ;;  %s3284_s1 = inlined_call_operand.hbm [shape: bf16[256,128], index: 1, kind: input, shape index: {}]   ;;  %s3285_s2 = inlined_call_operand.hbm [shape: bf16[128,128], index: 2, kind: input, shape index: {}]   ;;  %s3286_s3 = inlined_call_operand.vmem [shape: f32[1,128], index: 3, kind: input, shape index: {}]   ;;  %s3287_s4 = inlined_call_operand.vmem [shape: f32[1,128], index: 4, kind: input, shape index: {}]   ;;  %s3288_s5 = inlined_call_operand.vmem [shape: f32[1,128], index: 5, kind: input, shape index: {}]   ;;  %s3289_s6 = inlined_call_operand.hbm [shape: u32[256,128], index: 6, kind: input, shape index: {}]   ;;  %s3290_s7 = inlined_call_operand.hbm [shape: f32[256,128], index: 7, kind: output, shape index: {}]  }
   0x1   :  { %3299 = sst [smem:[#allocation19_spill]] %s3283_s0 }
   0x2   :  { %3300 = sst [smem:[#allocation20_spill]] %s3285_s2 }
   0x3   :  { %3301 = sst [smem:[#allocation21_spill]] %s3288_s5 }
   0x4   :  { %3302 = sst [smem:[#allocation22_spill]] %s3289_s6 }
   0x5   :  { %3303 = sst [smem:[#allocation23_spill]] %s3290_s7 }
   0x6   :  { %12 = vsyncpa [#allocation4], 0 }
   0x7   :  { %14 = vsyncpa [#allocation4 + $0x1], 0 }
   0x8   :  { %15 = vsyncpa [#allocation7], 0 }
   0x9   :  { %17 = vsyncpa [#allocation7 + $0x1], 0 }
   0xa   :  { %18 = vsyncpa [#allocation10], 0 }
   0xb   :  { %19 = vsyncpa [#allocation5], 0  ;;  %s2477_s24 = smov 0   ;;  %s2479_s25 = smov 0  }
   0xc   :  { %s2481_s26 = smov 0   ;;  %s2483_s27 = smov 0  }
   0xd   :  { %s2485_s28 = smov 0   ;;  %s2487_s29 = smov 0  }
   0xe LB: > { %3304 = sst [smem:[#allocation17_spill]] %s2423_s29  ;;  %s2506_s30 = sadd.s32 4294967295, %s2423_s29   ;;  %s2423_s29 = sphi %s2487_s29, %s25_s29   ;;  %s2419_s28 = sphi %s2485_s28, %s3330_s28   ;;  %s2415_s27 = sphi %s2483_s27, %s3329_s27   ;;  %s2411_s26 = sphi %s2481_s26, %s3328_s26   ;;  %s2407_s25 = sphi %s2479_s25, %s3327_s25   ;;  %s2403_s24 = sphi %s2477_s24, %s3326_s24  }
   0xf   : > { %p51_p0 = scmp.ne.s32.totalorder %s2411_s26, %s2407_s25  ;;  %p52_p1 = scmp.eq.s32.totalorder %s2423_s29, 0 }
  0x10   : > { %p57_p2 = scmp.ne.s32.totalorder %s2407_s25, %s2403_s24  ;;  %p3291_p3 = scmp.eq.s32.totalorder %s2506_s30, 0 }
  0x11   : > { %p53_p4 = por %p52_p1, %p51_p0  ;;  %p1797_p5 = scmp.ge.s32.totalorder %s2423_s29, 1 }
  0x12   : > { %p2517_p6 = por %p3291_p3, %p57_p2  ;;  %p250_p7 = scmp.lt.s32.totalorder %s2423_s29, 3 }
  0x13   : > { %s2425_s11 = smov [#allocation8]   ;;  %p2064_p10 = scmp.lt.s32.totalorder %s2423_s29, 2 }
  0x14   : > { %p2522_p8 = pnand %p1797_p5, %p250_p7  ;;  %s264_s12 = sshll.u32 %s2425_s11, 4  ;;  %s265_s12 = int_to_ptr.vmem [resolvable:$true] %s264_s12 }
  0x15   : > { %p2535_p12 = pnand %p2064_p10, %p53_p4  ;;  %s2426_s15 = smov [#allocation9]  }
  0x16   : > { %p2048_p9 = pneg %p2522_p8  ;;  %s297_s16 = sshll.u32 %s2426_s15, 4  ;;  %s298_s16 = int_to_ptr.vmem [resolvable:$true] %s297_s16 }
  0x17   : > { %s2236_s17 = scalar_lea.vmem %s265_s12, 1024  ;;  %p2244_p5 = scmp.lt.s32.totalorder %s265_s12, %s265_s12 }
  0x18   : > { %p2531_p11 = pnand %p2048_p9, %p3291_p3  ;;  %p2237_p0 = scmp.ne.s32.totalorder %s265_s12, %s2236_s17 }
  0x19   : > { %p2245_p7 = scmp.lt.s32.totalorder %s2236_s17, %s2236_s17 }
  0x1a   : > { %p2227_p13 = pneg %p2531_p11 }
  0x1b   : > { %p2246_p9 = por %p2245_p7, %p2244_p5 }
  0x1c   : > { %p2239_p1 = pnand %p2237_p0, %p2227_p13 }
  0x1e   : > { %p2240_p2 = pneg %p2239_p1 }
  0x20   : > { %p2247_p3 = pnand %p2246_p9, %p2240_p2 }
  0x22   : > { %2250 = shalt.err (!%p2247_p3)
}
  0x23   : > { %s3292_s18 = smov 64   ;;  %s3295_s19 = smov 4  }
  0x24   : > { %s3309_s2 = sld [smem:[#allocation20_spill]]  ;;  %s2262_s22 = scalar_lea.vmem %s298_s16, 4096 }
  0x25   : > { %p2263_p4 = scmp.ne.s32.totalorder %s298_s16, %s2262_s22  ;;  %p2270_p1 = scmp.lt.s32.totalorder %s298_s16, %s298_s16 }
  0x26   : > { %p2271_p3 = scmp.lt.s32.totalorder %s2262_s22, %s2262_s22 }
  0x27   : > { %p2265_p10 = pnand %p2263_p4, %p2227_p13 }
  0x28   : > { %p2272_p2 = por %p2271_p3, %p2270_p1 }
  0x29   : > { %p2266_p0 = pneg %p2265_p10 }
  0x2a   : > { %2051 = dma.hbm_to_vmem [thread:$0]  (!%p2531_p11), %s3309_s2, 1024, %s265_s12, [#allocation7], %s3292_s18, %s3292_s18, %s3295_s19  }
  0x2b   : > { %p2273_p5 = pnand %p2272_p2, %p2266_p0 }
  0x2d   : > { %2276 = shalt.err (!%p2273_p5)
}
  0x2e   : > { %s3294_s23 = smov 128   ;;  %s2430_s24 = smov 8  }
  0x2f   : > { %s3310_s6 = sld [smem:[#allocation22_spill]]  ;;  %s2563_s15 = sand.u32 1, %s2411_s26  }
  0x30   : > { %s34_s17 = sadd.s32 1, %s2419_s28  ;;  %s1804_s20 = sshll.u32 %s2563_s15, 7 }
  0x31   : > { %p35_p13 = scmp.ge.s32.totalorder %s34_s17, 2  ;;  %s1805_s21 = sshll.u32 %s2419_s28, 6 }
  0x32   : > { %s3312_s0 = sld [smem:[#allocation19_spill]]  ;;  %s315_s18 = scalar_lea.vmem [#allocation3], %s1804_s20 }
  0x33   : > { %s3332_s17 = smov (%p35_p13, %s34_s17), 0  ;;  %s321_s11 = sshll.u32 %s315_s18, 4  ;;  %s322_s11 = int_to_ptr.vmem [resolvable:$true] %s321_s11 }
  0x34   : > { %3311 = sst [smem:[#allocation18_spill]] %s3332_s17  ;;  %s41_s12 = ssub.s32 %s2419_s28, %s3332_s17 }
  0x35   : > { %2054 = dma.hbm_to_vmem [thread:$0]  (!%p2531_p11), %s3310_s6, 4096, %s298_s16, [#allocation10], %s3294_s23, %s3294_s23, %s2430_s24  }
  0x36   : > { %p2575_p11 = scmp.eq.s32.totalorder %s41_s12, 0  ;;  %s331_s24 = sand.u32 1, %s2423_s29  }
  0x37   : > { %s312_s23 = scalar_lea.sflag [#allocation4], %s2563_s15  ;;  %p2279_p7 = pneg %p2535_p12 }
  0x38   : > { %s320_s8 = scalar_lea.hbm %s3312_s0, %s1805_s21  ;;  %s2290_s19 = scalar_lea.vmem %s322_s11, 2048 }
  0x39   : > { %p2291_p9 = scmp.ne.s32.totalorder %s322_s11, %s2290_s19  ;;  %s2431_s22 = smov [#allocation3]  }
  0x3a   : > { %s2295_s21 = sshll.u32 %s2431_s22, 4  ;;  %s2296_s21 = int_to_ptr.vmem [resolvable:$false] %s2295_s21 }
  0x3b   : > { %p2293_p4 = pnand %p2291_p9, %p2279_p7  ;;  %s2297_s18 = scalar_lea.vmem %s2296_s21, 4096 }
  0x3c   : > { %p2298_p0 = scmp.lt.s32.totalorder %s322_s11, %s2296_s21  ;;  %p2299_p1 = scmp.lt.s32.totalorder %s2297_s18, %s2290_s19 }
  0x3d   : > { %p2294_p10 = pneg %p2293_p4 }
  0x3e   : > { %p2300_p3 = por %p2299_p1, %p2298_p0 }
  0x40   : > { %p2301_p2 = pnand %p2300_p3, %p2294_p10 }
  0x42   : > { %2304 = shalt.err (!%p2301_p2)
}
  0x43   : > { %s3314_s20 = smov 4   ;;  %s3315_s13 = smov 64  }
  0x44   : > { %s3316_s12 = smov 128   ;;  %s3317_s22 = sadd.s32 1, %s2411_s26 }
  0x45   : > { %2058 = dma.hbm_to_vmem [thread:$0]  (!%p2535_p12), %s320_s8, 2048, %s322_s11, %s312_s23, %s3316_s12, %s3315_s13, %s3314_s20  }
  0x46   : > { %s2596_s0 = scalar_select %p2575_p11, %s2411_s26, %s3317_s22  }
  0x47   : > { %s1806_s19 = sshll.u32 %s2563_s15, 6  ;;  %s1855_s21 = sshll.u32 %s2419_s28, 10 }
  0x48   : > { %s341_s6 = scalar_lea.hbm %s3284_s1, %s1855_s21  ;;  %s335_s17 = scalar_lea.vmem [#allocation6], %s1806_s19 }
  0x49   : > { %s342_s29 = sshll.u32 %s335_s17, 4  ;;  %s332_s7 = scalar_lea.sflag [#allocation7], %s331_s24  ;;  %s343_s29 = int_to_ptr.vmem [resolvable:$true] %s342_s29 }
  0x4a   : > { %s2318_s5 = scalar_lea.vmem %s343_s29, 1024  ;;  %s2432_s8 = smov [#allocation6]  }
  0x4b   : > { %p2319_p5 = scmp.ne.s32.totalorder %s343_s29, %s2318_s5  ;;  %s2323_s23 = sshll.u32 %s2432_s8, 4  ;;  %s2324_s23 = int_to_ptr.vmem [resolvable:$false] %s2323_s23 }
  0x4c   : > { %s2325_s11 = scalar_lea.vmem %s2324_s23, 2048  ;;  %p2326_p11 = scmp.lt.s32.totalorder %s343_s29, %s2324_s23 }
  0x4d   : > { %p2321_p13 = pnand %p2319_p5, %p2279_p7  ;;  %p2327_p4 = scmp.lt.s32.totalorder %s2325_s11, %s2318_s5 }
  0x4f   : > { %p2322_p9 = pneg %p2321_p13  ;;  %p2328_p10 = por %p2327_p4, %p2326_p11 }
  0x51   : > { %p2329_p0 = pnand %p2328_p10, %p2322_p9 }
  0x53   : > { %2332 = shalt.err (!%p2329_p0)
}
  0x54   : > { %2061 = dma.hbm_to_vmem [thread:$0]  (!%p2535_p12), %s341_s6, 1024, %s343_s29, %s332_s7, %s3315_s13, %s3315_s13, %s3314_s20  }
  0x55   : > { %354 = sbr.rel (%p2522_p8) target bundleno = 872 (0x368), region = 48  ;;  %s356_s2 = sand.u32 (!%p2522_p8), 1, %s2407_s25  }
  0x56   : > { %s1810_s15 = sshll.u32 (!%p2522_p8), %s356_s2, 7  ;;  %s357_s17 = scalar_lea.sflag (!%p2522_p8), [#allocation4], %s356_s2 }
  0x57   : > { %s2614_s16 = scalar_lea.vmem (!%p2522_p8), [#allocation3], %s1810_s15 }
  0x5a   : > { %2382 = dma.done.wait (%p2517_p6), %s357_s17, 2048  }
  0x5b   : > { %2384 = vsyncadd (%p2517_p6), %s357_s17, 4294965248  ;;  %s365_s5 = sand.u32 1, %s2506_s30   ;;  %s1811_s14 = sshll.u32 %s356_s2, 6 }
  0x5c   : > { %s366_s6 = scalar_lea.sflag [#allocation7], %s365_s5  ;;  %s2621_s7 = scalar_lea.vmem [#allocation6], %s1811_s14 }
  0x5d   : > { %2386 = dma.done.wait (%p2517_p6), %s366_s6, 1024  }
  0x5e   : > { %2388 = vsyncadd (%p2517_p6), %s366_s6, 4294966272  ;;  %p3318_p8 = scmp.eq.s32.totalorder %s2506_s30, 0 }
  0x60   : > { %2390 = dma.done.wait (%p3318_p8), [#allocation7], 1024   ;;  %p3319_p12 = pmov %p3318_p8 }
  0x61   : > { %p3320_p7 = pmov %p3318_p8 }
  0x62   : > { %2392 = vsyncadd (%p3319_p12), [#allocation7], 4294966272 }
  0x63   : > { %2394 = dma.done.wait (%p3320_p7), [#allocation10], 4096   ;;  %p3321_p1 = pmov %p3320_p7 }
  0x64   : > { %p1814_p3 = scmp.ne.s32.totalorder %s2415_s27, 0 }
  0x65   : > { %2396 = vsyncadd (%p3321_p1), [#allocation10], 4294963200 }
  0x66   : > { %431 = sbr.rel (%p1814_p3) target bundleno = 124 (0x7c), region = 68 }
  0x6b   : > { %v2433_v0 = vmov 0.0  }
  0x6c   : > { %432 = vst [vmem:[#allocation2 + $0xb0] sm:$0xff] %v2433_v0  ;;  %433 = vst [vmem:[#allocation2] sm:$0xff] %v2433_v0 }
  0x6d   : > { %434 = vst [vmem:[#allocation2 + $0xd8] sm:$0xff] %v2433_v0  ;;  %435 = vst [vmem:[#allocation2 + $0x18] sm:$0xff] %v2433_v0 }
  0x6e   : > { %436 = vst [vmem:[#allocation2 + $0x50] sm:$0xff] %v2433_v0  ;;  %437 = vst [vmem:[#allocation2 + $0x68] sm:$0xff] %v2433_v0 }
  0x6f   : > { %438 = vst [vmem:[#allocation2 + $0x30] sm:$0xff] %v2433_v0  ;;  %439 = vst [vmem:[#allocation2 + $0x48] sm:$0xff] %v2433_v0 }
  0x70   : > { %440 = vst [vmem:[#allocation2 + $0x80] sm:$0xff] %v2433_v0  ;;  %441 = vst [vmem:[#allocation2 + $0x88] sm:$0xff] %v2433_v0 }
  0x71   : > { %442 = vst [vmem:[#allocation2 + $0xe8] sm:$0xff] %v2433_v0  ;;  %443 = vst [vmem:[#allocation2 + $0xb8] sm:$0xff] %v2433_v0 }
  0x72   : > { %444 = vst [vmem:[#allocation2 + $0x60] sm:$0xff] %v2433_v0  ;;  %445 = vst [vmem:[#allocation2 + $0xf0] sm:$0xff] %v2433_v0 }
  0x73   : > { %446 = vst [vmem:[#allocation2 + $0x8] sm:$0xff] %v2433_v0  ;;  %447 = vst [vmem:[#allocation2 + $0x78] sm:$0xff] %v2433_v0 }
  0x74   : > { %448 = vst [vmem:[#allocation2 + $0x38] sm:$0xff] %v2433_v0  ;;  %449 = vst [vmem:[#allocation2 + $0x58] sm:$0xff] %v2433_v0 }
  0x75   : > { %450 = vst [vmem:[#allocation2 + $0x40] sm:$0xff] %v2433_v0  ;;  %451 = vst [vmem:[#allocation2 + $0xc8] sm:$0xff] %v2433_v0 }
  0x76   : > { %452 = vst [vmem:[#allocation2 + $0xe0] sm:$0xff] %v2433_v0  ;;  %453 = vst [vmem:[#allocation2 + $0x90] sm:$0xff] %v2433_v0 }
  0x77   : > { %454 = vst [vmem:[#allocation2 + $0x70] sm:$0xff] %v2433_v0  ;;  %455 = vst [vmem:[#allocation2 + $0xc0] sm:$0xff] %v2433_v0 }
  0x78   : > { %456 = vst [vmem:[#allocation2 + $0xa8] sm:$0xff] %v2433_v0  ;;  %457 = vst [vmem:[#allocation2 + $0xd0] sm:$0xff] %v2433_v0 }
  0x79   : > { %458 = vst [vmem:[#allocation2 + $0x10] sm:$0xff] %v2433_v0  ;;  %459 = vst [vmem:[#allocation2 + $0x28] sm:$0xff] %v2433_v0 }
  0x7a   : > { %460 = vst [vmem:[#allocation2 + $0xa0] sm:$0xff] %v2433_v0  ;;  %461 = vst [vmem:[#allocation2 + $0xf8] sm:$0xff] %v2433_v0 }
  0x7b   : > { %462 = vst [vmem:[#allocation2 + $0x20] sm:$0xff] %v2433_v0  ;;  %463 = vst [vmem:[#allocation2 + $0x98] sm:$0xff] %v2433_v0 }
  0x7c PF: > { %v2127_v1 = vld [vmem:[%s2621_s7 + $0x38] sm:$0xff]   ;;  %v2128_v2 = vld [vmem:[%s2621_s7 + $0x30] sm:$0xff]   ;;  %v2129_v3 = vld [vmem:[%s2621_s7 + $0x28] sm:$0xff]   ;;  %p1839_p6 = scmp.ne.s32.totalorder %s2415_s27, 1 }
  0x7d   : > { %1904 = vmatprep.subr.bf16.mxu0 %v2127_v1  ;;  %2000 = vmatprep.subr.bf16.mxu1 %v2127_v1  ;;  %v2130_v4 = vld [vmem:[%s2621_s7 + $0x20] sm:$0xff]   ;;  %v2131_v7 = vld [vmem:[%s2621_s7 + $0x18] sm:$0xff]   ;;  %v2132_v8 = vld [vmem:[%s2621_s7 + $0x10] sm:$0xff]   ;;  %s3322_s13 = sld [smem:[#allocation21_spill]] (!%p1839_p6) }
  0x7e   : > { %1905 = vmatpush3.bf16.msra.mxu0 %v2127_v1  ;;  %2008 = vmatpush3.bf16.msra.mxu1 %v2127_v1  ;;  %v2135_v5 = vld [vmem:[%s2614_s16] sm:$0xff]   ;;  %v2133_v9 = vld [vmem:[%s2621_s7 + $0x8] sm:$0xff]   ;;  %v2139_v13 = vld [vmem:[%s2614_s16 + $0x10] sm:$0xff]  }
  0x7f   : > { %1906 = vmatprep.subr.bf16.mxu0 %v2128_v2  ;;  %2001 = vmatprep.subr.bf16.mxu1 %v2128_v2  ;;  %v2136_v6 = vld [vmem:[%s2614_s16 + $0x40] sm:$0xff]   ;;  %v2137_v11 = vld [vmem:[%s2614_s16 + $0x8] sm:$0xff]   ;;  %v2140_v14 = vld [vmem:[%s2614_s16 + $0x50] sm:$0xff]  }
  0x80   : > { %1920 = vmatprep.mubr.bf16.mxu0 %v2135_v5  ;;  %1936 = vmatprep.mubr.bf16.mxu1 %v2136_v6  ;;  %v2134_v10 = vld [vmem:[%s2621_s7] sm:$0xff]   ;;  %v2138_v12 = vld [vmem:[%s2614_s16 + $0x48] sm:$0xff]   ;;  %v2141_v15 = vld [vmem:[%s2614_s16 + $0x18] sm:$0xff]  }
  0x81   : > { %v2142_v16 = vld [vmem:[%s2614_s16 + $0x58] sm:$0xff]   ;;  %v2143_v17 = vld [vmem:[%s2614_s16 + $0x20] sm:$0xff]   ;;  %v2145_v19 = vld [vmem:[%s2614_s16 + $0x28] sm:$0xff]  }
  0x82   : > { %1907 = vmatpush3.bf16.msra.mxu0 %v2128_v2  ;;  %2009 = vmatpush3.bf16.msra.mxu1 %v2128_v2  ;;  %v2144_v18 = vld [vmem:[%s2614_s16 + $0x60] sm:$0xff]   ;;  %v2146_v20 = vld [vmem:[%s2614_s16 + $0x68] sm:$0xff]   ;;  %v2147_v21 = vld [vmem:[%s2614_s16 + $0x30] sm:$0xff]  }
  0x83   : > { %1908 = vmatprep.subr.bf16.mxu0 %v2129_v3  ;;  %2002 = vmatprep.subr.bf16.mxu1 %v2129_v3  ;;  %v2148_v22 = vld [vmem:[%s2614_s16 + $0x70] sm:$0xff]   ;;  %v2149_v23 = vld [vmem:[%s2614_s16 + $0x38] sm:$0xff]   ;;  %v482_v26 = vld [vmem:[#allocation2 + $0x40] sm:$0xff] }
  0x84   : > { %v2150_v24 = vld [vmem:[%s2614_s16 + $0x78] sm:$0xff]   ;;  %v464_v29 = vld [vmem:[#allocation2 + $0xb0] sm:$0xff]  ;;  %v483_v36 = vld [vmem:[#allocation2 + $0xc8] sm:$0xff] }
  0x85   : > { %v466_v25 = vld [vmem:[#allocation2 + $0xd8] sm:$0xff]  ;;  %v465_v41 = vld [vmem:[#allocation2] sm:$0xff]  ;;  %v470_v47 = vld [vmem:[#allocation2 + $0x30] sm:$0xff] }
  0x86   : > { %1909 = vmatpush3.bf16.msra.mxu0 %v2129_v3  ;;  %2010 = vmatpush3.bf16.msra.mxu1 %v2129_v3  ;;  %v480_v30 = vld [vmem:[#allocation2 + $0x38] sm:$0xff]  ;;  %v486_v48 = vld [vmem:[#allocation2 + $0x70] sm:$0xff]  ;;  %v484_v54 = vld [vmem:[#allocation2 + $0xe0] sm:$0xff] }
  0x87   : > { %1910 = vmatprep.subr.bf16.mxu0 %v2130_v4  ;;  %2003 = vmatprep.subr.bf16.mxu1 %v2130_v4  ;;  %v467_v35 = vld [vmem:[#allocation2 + $0x18] sm:$0xff]  ;;  %v468_v53 = vld [vmem:[#allocation2 + $0x50] sm:$0xff]  ;;  %v471_v59 = vld [vmem:[#allocation2 + $0x48] sm:$0xff] }
  0x88   : > { %v481_v42 = vld [vmem:[#allocation2 + $0x58] sm:$0xff]  ;;  %v487_v60 = vld [vmem:[#allocation2 + $0xc0] sm:$0xff]  ;;  %v469_v1 = vld [vmem:[#allocation2 + $0x68] sm:$0xff] }
  0x89   : > { %v485_v2 = vld [vmem:[#allocation2 + $0x90] sm:$0xff] }
  0x8a   : > { %1911 = vmatpush3.bf16.msra.mxu0 %v2130_v4  ;;  %2011 = vmatpush3.bf16.msra.mxu1 %v2130_v4 }
  0x8b   : > { %1912 = vmatprep.subr.bf16.mxu0 %v2131_v7  ;;  %2004 = vmatprep.subr.bf16.mxu1 %v2131_v7 }
  0x8e   : > { %1913 = vmatpush3.bf16.msra.mxu0 %v2131_v7  ;;  %2012 = vmatpush3.bf16.msra.mxu1 %v2131_v7  ;;  %v474_v7 = vld [vmem:[#allocation2 + $0xe8] sm:$0xff] }
  0x8f   : > { %1914 = vmatprep.subr.bf16.mxu0 %v2132_v8  ;;  %2005 = vmatprep.subr.bf16.mxu1 %v2132_v8 }
  0x92   : > { %1915 = vmatpush3.bf16.msra.mxu0 %v2132_v8  ;;  %2013 = vmatpush3.bf16.msra.mxu1 %v2132_v8  ;;  %v490_v8 = vld [vmem:[#allocation2 + $0x10] sm:$0xff] }
  0x93   : > { %1916 = vmatprep.subr.bf16.mxu0 %v2133_v9  ;;  %2006 = vmatprep.subr.bf16.mxu1 %v2133_v9 }
  0x96   : > { %1917 = vmatpush3.bf16.msra.mxu0 %v2133_v9  ;;  %2014 = vmatpush3.bf16.msra.mxu1 %v2133_v9 }
  0x97   : > { %1918 = vmatprep.subr.bf16.mxu0 %v2134_v10  ;;  %2007 = vmatprep.subr.bf16.mxu1 %v2134_v10 }
  0x9a   : > { %1919 = vmatpush3.bf16.msra.mxu0 %v2134_v10  ;;  %2015 = vmatpush3.bf16.msra.mxu1 %v2134_v10 }
  0x9d   : > { %1921 = vmatmul.mubr.bf16.vlgmr.msra.gmra.mxu0 %v2137_v11  ;;  %1937 = vmatmul.mubr.bf16.vlgmr.msra.gmra.mxu1 %v2138_v12 }
  0x9e   : > { %1924 = vmatprep.mubr.bf16.mxu0 %v2139_v13  ;;  %1940 = vmatprep.mubr.bf16.mxu1 %v2140_v14  ;;  %v472_v13 = vld [vmem:[#allocation2 + $0x80] sm:$0xff]  ;;  %v488_v14 = vld [vmem:[#allocation2 + $0xa8] sm:$0xff] }
  0xa5   : > { %1925 = vmatmul.mubr.bf16.gmra.mxu0 %v2141_v15  ;;  %1941 = vmatmul.mubr.bf16.gmra.mxu1 %v2142_v16 }
  0xa6   : > { %1928 = vmatprep.mubr.bf16.mxu0 %v2143_v17  ;;  %1944 = vmatprep.mubr.bf16.mxu1 %v2144_v18 }
  0xad   : > { %1929 = vmatmul.mubr.bf16.gmra.mxu0 %v2145_v19  ;;  %1945 = vmatmul.mubr.bf16.gmra.mxu1 %v2146_v20  ;;  %v475_v19 = vld [vmem:[#allocation2 + $0xb8] sm:$0xff]  ;;  %v491_v20 = vld [vmem:[#allocation2 + $0x28] sm:$0xff] }
  0xae   : > { %1932 = vmatprep.mubr.bf16.mxu0 %v2147_v21  ;;  %1948 = vmatprep.mubr.bf16.mxu1 %v2148_v22 }
  0xb5   : > { %1933 = vmatmul.mubr.bf16.gmra.mxu0 %v2149_v23  ;;  %1949 = vmatmul.mubr.bf16.gmra.mxu1 %v2150_v24 }
 0x15d   : > { %v1922_v27 = vpop.f32.mrf.mxu0  ;;  %v1938_v28 = vpop.f32.mrf.mxu1 }
 0x15e   : > { %v851_v31 = vadd.f32 %v1922_v27, %v466_v25  ;;  %v867_v32 = vadd.f32 %v1938_v28, %v482_v26  ;;  %v473_v25 = vld [vmem:[#allocation2 + $0x88] sm:$0xff]  ;;  %v489_v26 = vld [vmem:[#allocation2 + $0xd0] sm:$0xff] }
 0x15f   : > { %v722_v33 = vpop.f32.mrf.mxu0  ;;  %v786_v34 = vpop.f32.mrf.mxu1 }
 0x160   : > { %883 = vst [vmem:[#allocation2 + $0xd8] sm:$0xff] %v851_v31  ;;  %899 = vst [vmem:[#allocation2 + $0x40] sm:$0xff] %v867_v32  ;;  %v849_v37 = vadd.f32 %v722_v33, %v464_v29  ;;  %v865_v38 = vadd.f32 %v786_v34, %v480_v30  ;;  %v478_v31 = vld [vmem:[#allocation2 + $0x8] sm:$0xff]  ;;  %v494_v32 = vld [vmem:[#allocation2 + $0x20] sm:$0xff] }
 0x161   : > { %v1923_v39 = vpop.f32.mrf.mxu0  ;;  %v1939_v40 = vpop.f32.mrf.mxu1 }
 0x162   : > { %881 = vst [vmem:[#allocation2 + $0xb0] sm:$0xff] %v849_v37  ;;  %897 = vst [vmem:[#allocation2 + $0x38] sm:$0xff] %v865_v38  ;;  %v852_v43 = vadd.f32 %v1923_v39, %v467_v35  ;;  %v868_v44 = vadd.f32 %v1939_v40, %v483_v36  ;;  %v476_v37 = vld [vmem:[#allocation2 + $0x60] sm:$0xff] }
 0x163   : > { %v725_v45 = vpop.f32.mrf.mxu0  ;;  %v789_v46 = vpop.f32.mrf.mxu1  ;;  %v492_v38 = vld [vmem:[#allocation2 + $0xa0] sm:$0xff] }
 0x164   : > { %884 = vst [vmem:[#allocation2 + $0x18] sm:$0xff] %v852_v43  ;;  %900 = vst [vmem:[#allocation2 + $0xc8] sm:$0xff] %v868_v44  ;;  %v850_v49 = vadd.f32 %v725_v45, %v465_v41  ;;  %v866_v50 = vadd.f32 %v789_v46, %v481_v42  ;;  %v479_v43 = vld [vmem:[#allocation2 + $0x78] sm:$0xff] }
 0x165   : > { %v1926_v51 = vpop.f32.mrf.mxu0  ;;  %v1942_v52 = vpop.f32.mrf.mxu1  ;;  %v495_v44 = vld [vmem:[#allocation2 + $0x98] sm:$0xff] }
 0x166   : > { %882 = vst [vmem:[#allocation2] sm:$0xff] %v850_v49  ;;  %898 = vst [vmem:[#allocation2 + $0x58] sm:$0xff] %v866_v50  ;;  %v855_v55 = vadd.f32 %v1926_v51, %v470_v47  ;;  %v871_v56 = vadd.f32 %v1942_v52, %v486_v48  ;;  %v477_v49 = vld [vmem:[#allocation2 + $0xf0] sm:$0xff]  ;;  %v493_v50 = vld [vmem:[#allocation2 + $0xf8] sm:$0xff] }
 0x167   : > { %v738_v57 = vpop.f32.mrf.mxu0  ;;  %v802_v58 = vpop.f32.mrf.mxu1 }
 0x168   : > { %887 = vst [vmem:[#allocation2 + $0x30] sm:$0xff] %v855_v55  ;;  %903 = vst [vmem:[#allocation2 + $0x70] sm:$0xff] %v871_v56  ;;  %v853_v61 = vadd.f32 %v738_v57, %v468_v53  ;;  %v869_v62 = vadd.f32 %v802_v58, %v484_v54 }
 0x169   : > { %v1927_v63 = vpop.f32.mrf.mxu0  ;;  %v1943_v0 = vpop.f32.mrf.mxu1 }
 0x16a   : > { %885 = vst [vmem:[#allocation2 + $0x50] sm:$0xff] %v853_v61  ;;  %901 = vst [vmem:[#allocation2 + $0xe0] sm:$0xff] %v869_v62  ;;  %v856_v3 = vadd.f32 %v1927_v63, %v471_v59  ;;  %v872_v4 = vadd.f32 %v1943_v0, %v487_v60 }
 0x16b   : > { %v741_v5 = vpop.f32.mrf.mxu0  ;;  %v805_v6 = vpop.f32.mrf.mxu1 }
 0x16c   : > { %888 = vst [vmem:[#allocation2 + $0x48] sm:$0xff] %v856_v3  ;;  %904 = vst [vmem:[#allocation2 + $0xc0] sm:$0xff] %v872_v4  ;;  %v854_v9 = vadd.f32 %v741_v5, %v469_v1  ;;  %v870_v10 = vadd.f32 %v805_v6, %v485_v2 }
 0x16d   : > { %v1930_v11 = vpop.f32.mrf.mxu0  ;;  %v1946_v12 = vpop.f32.mrf.mxu1 }
 0x16e   : > { %886 = vst [vmem:[#allocation2 + $0x68] sm:$0xff] %v854_v9  ;;  %902 = vst [vmem:[#allocation2 + $0x90] sm:$0xff] %v870_v10  ;;  %v859_v15 = vadd.f32 %v1930_v11, %v474_v7  ;;  %v875_v16 = vadd.f32 %v1946_v12, %v490_v8 }
 0x16f   : > { %v754_v17 = vpop.f32.mrf.mxu0  ;;  %v818_v18 = vpop.f32.mrf.mxu1 }
 0x170   : > { %891 = vst [vmem:[#allocation2 + $0xe8] sm:$0xff] %v859_v15  ;;  %907 = vst [vmem:[#allocation2 + $0x10] sm:$0xff] %v875_v16  ;;  %v857_v21 = vadd.f32 %v754_v17, %v472_v13  ;;  %v873_v22 = vadd.f32 %v818_v18, %v488_v14 }
 0x171   : > { %v1931_v23 = vpop.f32.mrf.mxu0  ;;  %v1947_v24 = vpop.f32.mrf.mxu1 }
 0x172   : > { %889 = vst [vmem:[#allocation2 + $0x80] sm:$0xff] %v857_v21  ;;  %905 = vst [vmem:[#allocation2 + $0xa8] sm:$0xff] %v873_v22  ;;  %v860_v27 = vadd.f32 %v1931_v23, %v475_v19  ;;  %v876_v28 = vadd.f32 %v1947_v24, %v491_v20 }
 0x173   : > { %v757_v29 = vpop.f32.mrf.mxu0  ;;  %v821_v30 = vpop.f32.mrf.mxu1 }
 0x174   : > { %892 = vst [vmem:[#allocation2 + $0xb8] sm:$0xff] %v860_v27  ;;  %908 = vst [vmem:[#allocation2 + $0x28] sm:$0xff] %v876_v28  ;;  %v858_v33 = vadd.f32 %v757_v29, %v473_v25  ;;  %v874_v34 = vadd.f32 %v821_v30, %v489_v26 }
 0x175   : > { %v1934_v35 = vpop.f32.mrf.mxu0  ;;  %v1950_v36 = vpop.f32.mrf.mxu1 }
 0x176   : > { %890 = vst [vmem:[#allocation2 + $0x88] sm:$0xff] %v858_v33  ;;  %906 = vst [vmem:[#allocation2 + $0xd0] sm:$0xff] %v874_v34  ;;  %v863_v39 = vadd.f32 %v1934_v35, %v478_v31  ;;  %v879_v40 = vadd.f32 %v1950_v36, %v494_v32 }
 0x177   : > { %v770_v41 = vpop.f32.mrf.mxu0  ;;  %v834_v42 = vpop.f32.mrf.mxu1 }
 0x178   : > { %895 = vst [vmem:[#allocation2 + $0x8] sm:$0xff] %v863_v39  ;;  %911 = vst [vmem:[#allocation2 + $0x20] sm:$0xff] %v879_v40  ;;  %v861_v45 = vadd.f32 %v770_v41, %v476_v37  ;;  %v877_v46 = vadd.f32 %v834_v42, %v492_v38 }
 0x179   : > { %v1935_v47 = vpop.f32.mrf.mxu0  ;;  %v1951_v48 = vpop.f32.mrf.mxu1 }
 0x17a   : > { %893 = vst [vmem:[#allocation2 + $0x60] sm:$0xff] %v861_v45  ;;  %909 = vst [vmem:[#allocation2 + $0xa0] sm:$0xff] %v877_v46  ;;  %v864_v51 = vadd.f32 %v1935_v47, %v479_v43  ;;  %v880_v52 = vadd.f32 %v1951_v48, %v495_v44  ;;  %916 = sbr.rel (%p1839_p6) target bundleno = 850 (0x352), region = 72 }
 0x17b   : > { %v773_v53 = vpop.f32.mrf.mxu0  ;;  %v837_v54 = vpop.f32.mrf.mxu1 }
 0x17c   : > { %896 = vst [vmem:[#allocation2 + $0x78] sm:$0xff] %v864_v51  ;;  %912 = vst [vmem:[#allocation2 + $0x98] sm:$0xff] %v880_v52  ;;  %v862_v55 = vadd.f32 %v773_v53, %v477_v49  ;;  %v878_v56 = vadd.f32 %v837_v54, %v493_v50 }
 0x17e   : > { %894 = vst [vmem:[#allocation2 + $0xf0] sm:$0xff] %v862_v55  ;;  %910 = vst [vmem:[#allocation2 + $0xf8] sm:$0xff] %v878_v56 }
 0x17f   : > { %v2151_v57 = vld [vmem:[#allocation8 + $0x38] sm:$0xff]   ;;  %v2152_v58 = vld [vmem:[#allocation8 + $0x30] sm:$0xff]   ;;  %v2153_v59 = vld [vmem:[#allocation8 + $0x28] sm:$0xff]  }
 0x180   : > { %1952 = vmatprep.subr.bf16.mxu0 %v2151_v57  ;;  %2016 = vmatprep.subr.bf16.mxu1 %v2151_v57  ;;  %v2154_v60 = vld [vmem:[#allocation8 + $0x20] sm:$0xff]   ;;  %v917_v61 = vld [vmem:[#allocation2 + $0xb0] sm:$0xff]  ;;  %v2155_v0 = vld [vmem:[#allocation8 + $0x18] sm:$0xff]  }
 0x181   : > { %1953 = vmatpush3.bf16.msra.mxu0 %v2151_v57  ;;  %2024 = vmatpush3.bf16.msra.mxu1 %v2151_v57  ;;  %v918_v62 = vld [vmem:[#allocation2] sm:$0xff]  ;;  %v933_v1 = vld [vmem:[#allocation2 + $0x38] sm:$0xff]  ;;  %v2156_v4 = vld [vmem:[#allocation8 + $0x10] sm:$0xff]  }
 0x182   : > { %1954 = vmatprep.subr.bf16.mxu0 %v2152_v58  ;;  %2017 = vmatprep.subr.bf16.mxu1 %v2152_v58  ;;  %v949_v63 = vpack.c.bf16 %v918_v62, %v917_v61  ;;  %v934_v2 = vld [vmem:[#allocation2 + $0x58] sm:$0xff]  ;;  %v2157_v5 = vld [vmem:[#allocation8 + $0x8] sm:$0xff]   ;;  %v2158_v6 = vld [vmem:[#allocation8] sm:$0xff]  }
 0x183   : > { %v957_v3 = vpack.c.bf16 %v934_v2, %v933_v1  ;;  %v919_v7 = vld [vmem:[#allocation2 + $0xd8] sm:$0xff]  ;;  %v921_v9 = vld [vmem:[#allocation2 + $0x50] sm:$0xff]  ;;  %v922_v10 = vld [vmem:[#allocation2 + $0x68] sm:$0xff] }
 0x184   : > { %1968 = vmatprep.mubr.bf16.mxu0 %v949_v63  ;;  %v920_v8 = vld [vmem:[#allocation2 + $0x18] sm:$0xff]  ;;  %v935_v11 = vld [vmem:[#allocation2 + $0x40] sm:$0xff]  ;;  %v936_v12 = vld [vmem:[#allocation2 + $0xc8] sm:$0xff]  ;;  %v951_v16 = vpack.c.bf16 %v922_v10, %v921_v9 }
 0x185   : > { %1955 = vmatpush3.bf16.msra.mxu0 %v2152_v58  ;;  %2025 = vmatpush3.bf16.msra.mxu1 %v2152_v58  ;;  %v937_v13 = vld [vmem:[#allocation2 + $0xe0] sm:$0xff]  ;;  %v938_v14 = vld [vmem:[#allocation2 + $0x90] sm:$0xff]  ;;  %v950_v15 = vpack.c.bf16 %v920_v8, %v919_v7  ;;  %v958_v17 = vpack.c.bf16 %v936_v12, %v935_v11  ;;  %v924_v20 = vld [vmem:[#allocation2 + $0x48] sm:$0xff] }
 0x186   : > { %1956 = vmatprep.subr.bf16.mxu0 %v2153_v59  ;;  %2018 = vmatprep.subr.bf16.mxu1 %v2153_v59  ;;  %v959_v18 = vpack.c.bf16 %v938_v14, %v937_v13  ;;  %v923_v19 = vld [vmem:[#allocation2 + $0x30] sm:$0xff]  ;;  %v925_v21 = vld [vmem:[#allocation2 + $0x80] sm:$0xff]  ;;  %v926_v22 = vld [vmem:[#allocation2 + $0x88] sm:$0xff] }
 0x187   : > { %1984 = vmatprep.mubr.bf16.mxu1 %v957_v3  ;;  %v939_v23 = vld [vmem:[#allocation2 + $0x70] sm:$0xff]  ;;  %v940_v24 = vld [vmem:[#allocation2 + $0xc0] sm:$0xff]  ;;  %v941_v25 = vld [vmem:[#allocation2 + $0xa8] sm:$0xff]  ;;  %v952_v27 = vpack.c.bf16 %v924_v20, %v923_v19  ;;  %v953_v28 = vpack.c.bf16 %v926_v22, %v925_v21 }
 0x188   : > { %v942_v26 = vld [vmem:[#allocation2 + $0xd0] sm:$0xff]  ;;  %v960_v29 = vpack.c.bf16 %v940_v24, %v939_v23  ;;  %v927_v31 = vld [vmem:[#allocation2 + $0xe8] sm:$0xff]  ;;  %v928_v32 = vld [vmem:[#allocation2 + $0xb8] sm:$0xff] }
 0x189   : > { %1957 = vmatpush3.bf16.msra.mxu0 %v2153_v59  ;;  %2026 = vmatpush3.bf16.msra.mxu1 %v2153_v59  ;;  %v961_v30 = vpack.c.bf16 %v942_v26, %v941_v25  ;;  %v929_v33 = vld [vmem:[#allocation2 + $0x60] sm:$0xff]  ;;  %v930_v34 = vld [vmem:[#allocation2 + $0xf0] sm:$0xff]  ;;  %v944_v36 = vld [vmem:[#allocation2 + $0x28] sm:$0xff]  ;;  %v954_v39 = vpack.c.bf16 %v928_v32, %v927_v31 }
 0x18a   : > { %1958 = vmatprep.subr.bf16.mxu0 %v2154_v60  ;;  %2019 = vmatprep.subr.bf16.mxu1 %v2154_v60  ;;  %v943_v35 = vld [vmem:[#allocation2 + $0x10] sm:$0xff]  ;;  %v945_v37 = vld [vmem:[#allocation2 + $0xa0] sm:$0xff]  ;;  %v946_v38 = vld [vmem:[#allocation2 + $0xf8] sm:$0xff]  ;;  %v955_v40 = vpack.c.bf16 %v930_v34, %v929_v33 }
 0x18b   : > { %v962_v41 = vpack.c.bf16 %v944_v36, %v943_v35  ;;  %v963_v42 = vpack.c.bf16 %v946_v38, %v945_v37  ;;  %v931_v43 = vld [vmem:[#allocation2 + $0x8] sm:$0xff]  ;;  %v932_v44 = vld [vmem:[#allocation2 + $0x78] sm:$0xff]  ;;  %v947_v45 = vld [vmem:[#allocation2 + $0x20] sm:$0xff] }
 0x18c   : > { %v948_v46 = vld [vmem:[#allocation2 + $0x98] sm:$0xff]  ;;  %v956_v47 = vpack.c.bf16 %v932_v44, %v931_v43  ;;  %v2664_v54 = vld [vmem:[%s3286_s3] ss:$0 sm:$0xff] }
 0x18d   : > { %1959 = vmatpush3.bf16.msra.mxu0 %v2154_v60  ;;  %2027 = vmatpush3.bf16.msra.mxu1 %v2154_v60  ;;  %v964_v48 = vpack.c.bf16 %v948_v46, %v947_v45 }
 0x18e   : > { %1960 = vmatprep.subr.bf16.mxu0 %v2155_v0  ;;  %2020 = vmatprep.subr.bf16.mxu1 %v2155_v0 }
 0x191   : > { %1961 = vmatpush3.bf16.msra.mxu0 %v2155_v0  ;;  %2028 = vmatpush3.bf16.msra.mxu1 %v2155_v0 }
 0x192   : > { %1962 = vmatprep.subr.bf16.mxu0 %v2156_v4  ;;  %2021 = vmatprep.subr.bf16.mxu1 %v2156_v4 }
 0x195   : > { %1963 = vmatpush3.bf16.msra.mxu0 %v2156_v4  ;;  %2029 = vmatpush3.bf16.msra.mxu1 %v2156_v4 }
 0x196   : > { %1964 = vmatprep.subr.bf16.mxu0 %v2157_v5  ;;  %2022 = vmatprep.subr.bf16.mxu1 %v2157_v5 }
 0x199   : > { %1965 = vmatpush3.bf16.msra.mxu0 %v2157_v5  ;;  %2030 = vmatpush3.bf16.msra.mxu1 %v2157_v5 }
 0x19a   : > { %1966 = vmatprep.subr.bf16.mxu0 %v2158_v6  ;;  %2023 = vmatprep.subr.bf16.mxu1 %v2158_v6 }
 0x19d   : > { %1967 = vmatpush3.bf16.msra.mxu0 %v2158_v6  ;;  %2031 = vmatpush3.bf16.msra.mxu1 %v2158_v6 }
 0x1a0   : > { %1969 = vmatmul.mubr.bf16.vlgmr.msra.gmra.mxu0 %v950_v15  ;;  %1985 = vmatmul.mubr.bf16.vlgmr.msra.gmra.mxu1 %v958_v17 }
 0x1a1   : > { %1972 = vmatprep.mubr.bf16.mxu0 %v951_v16  ;;  %1988 = vmatprep.mubr.bf16.mxu1 %v959_v18 }
 0x1a8   : > { %1973 = vmatmul.mubr.bf16.gmra.mxu0 %v952_v27  ;;  %1989 = vmatmul.mubr.bf16.gmra.mxu1 %v960_v29 }
 0x1a9   : > { %1976 = vmatprep.mubr.bf16.mxu0 %v953_v28  ;;  %1992 = vmatprep.mubr.bf16.mxu1 %v961_v30 }
 0x1b0   : > { %1977 = vmatmul.mubr.bf16.gmra.mxu0 %v954_v39  ;;  %1993 = vmatmul.mubr.bf16.gmra.mxu1 %v962_v41 }
 0x1b1   : > { %1980 = vmatprep.mubr.bf16.mxu0 %v955_v40  ;;  %1996 = vmatprep.mubr.bf16.mxu1 %v963_v42 }
 0x1b8   : > { %1981 = vmatmul.mubr.bf16.gmra.mxu0 %v956_v47  ;;  %1997 = vmatmul.mubr.bf16.gmra.mxu1 %v964_v48 }
 0x260   : > { %v1970_v49 = vpop.f32.mrf.mxu0  ;;  %v1986_v50 = vpop.f32.mrf.mxu1 }
 0x261   : > { %v2673_v60 = vadd.f32 %v1970_v49, %v2664_v54  ;;  %v2738_v47 = vadd.f32 %v1986_v50, %v2664_v54 }
 0x262   : > { %v1070_v51 = vpop.f32.mrf.mxu0  ;;  %v1134_v53 = vpop.f32.mrf.mxu1 }
 0x263   : > { %v2667_v56 = vadd.f32 %v2664_v54, %v1070_v51  ;;  %v2730_v42 = vadd.f32 %v2664_v54, %v1134_v53 }
 0x264   : > { %v1971_v52 = vpop.f32.mrf.mxu0  ;;  %v1987_v59 = vpop.f32.mrf.mxu1 }
 0x265   : > { %v2678_v63 = vadd.f32 %v1971_v52, %v2664_v54  ;;  %v2742_v49 = vadd.f32 %v1987_v59, %v2664_v54 }
 0x266   : > { %v1073_v55 = vpop.f32.mrf.mxu0  ;;  %v1137_v2 = vpop.f32.mrf.mxu1 }
 0x267   : > { %v2670_v57 = vadd.f32 %v2664_v54, %v1073_v55  ;;  %v2734_v44 = vadd.f32 %v2664_v54, %v1137_v2 }
 0x268   : > { %v1974_v58 = vpop.f32.mrf.mxu0  ;;  %v1990_v9 = vpop.f32.mrf.mxu1 }
 0x269   : > { %v1197_v61 = vadd.f32 %v2670_v57, %v2667_v56  ;;  %v2690_v10 = vadd.f32 %v1974_v58, %v2664_v54 }
 0x26a   : > { %v1086_v62 = vpop.f32.mrf.mxu0  ;;  %v1150_v16 = vpop.f32.mrf.mxu1 }
 0x26b   : > { %v1198_v0 = vadd.f32 %v1197_v61, %v2673_v60  ;;  %v2682_v3 = vadd.f32 %v2664_v54, %v1086_v62  ;;  %v2746_v53 = vadd.f32 %v2664_v54, %v1150_v16  ;;  %v2754_v62 = vadd.f32 %v1990_v9, %v2664_v54 }
 0x26c   : > { %v1975_v1 = vpop.f32.mrf.mxu0  ;;  %v1991_v23 = vpop.f32.mrf.mxu1 }
 0x26d   : > { %v1199_v4 = vadd.f32 %v1198_v0, %v2678_v63  ;;  %v2694_v13 = vadd.f32 %v1975_v1, %v2664_v54  ;;  %v2758_v0 = vadd.f32 %v1991_v23, %v2664_v54 }
 0x26e   : > { %v1089_v5 = vpop.f32.mrf.mxu0  ;;  %v1153_v30 = vpop.f32.mrf.mxu1 }
 0x26f   : > { %v1200_v6 = vadd.f32 %v1199_v4, %v2682_v3  ;;  %v2687_v7 = vadd.f32 %v2664_v54, %v1089_v5  ;;  %v2751_v61 = vadd.f32 %v2664_v54, %v1153_v30 }
 0x270   : > { %v1978_v8 = vpop.f32.mrf.mxu0  ;;  %v1994_v36 = vpop.f32.mrf.mxu1 }
 0x271   : > { %v1201_v11 = vadd.f32 %v1200_v6, %v2687_v7  ;;  %v2706_v24 = vadd.f32 %v1978_v8, %v2664_v54 }
 0x272   : > { %v1102_v12 = vpop.f32.mrf.mxu0  ;;  %v1166_v41 = vpop.f32.mrf.mxu1 }
 0x273   : > { %v1202_v14 = vadd.f32 %v1201_v11, %v2690_v10  ;;  %v2698_v17 = vadd.f32 %v2664_v54, %v1102_v12  ;;  %v2762_v4 = vadd.f32 %v2664_v54, %v1166_v41  ;;  %v2770_v11 = vadd.f32 %v1994_v36, %v2664_v54 }
 0x274   : > { %v1979_v15 = vpop.f32.mrf.mxu0  ;;  %v1995_v46 = vpop.f32.mrf.mxu1 }
 0x275   : > { %v1203_v18 = vadd.f32 %v1202_v14, %v2694_v13  ;;  %v2710_v27 = vadd.f32 %v1979_v15, %v2664_v54  ;;  %v2774_v14 = vadd.f32 %v1995_v46, %v2664_v54 }
 0x276   : > { %v1105_v19 = vpop.f32.mrf.mxu0  ;;  %v1169_v52 = vpop.f32.mrf.mxu1 }
 0x277   : > { %v1204_v20 = vadd.f32 %v1203_v18, %v2698_v17  ;;  %v2703_v21 = vadd.f32 %v2664_v54, %v1105_v19  ;;  %v2767_v8 = vadd.f32 %v2664_v54, %v1169_v52 }
 0x278   : > { %v1982_v22 = vpop.f32.mrf.mxu0  ;;  %v1998_v50 = vpop.f32.mrf.mxu1 }
 0x279   : > { %v1205_v25 = vadd.f32 %v1204_v20, %v2703_v21  ;;  %v2722_v37 = vadd.f32 %v1982_v22, %v2664_v54  ;;  %v2786_v23 = vadd.f32 %v1998_v50, %v2664_v54 }
 0x27a   : > { %v1118_v26 = vpop.f32.mrf.mxu0  ;;  %v1182_v2 = vpop.f32.mrf.mxu1 }
 0x27b   : > { %v1206_v28 = vadd.f32 %v1205_v25, %v2706_v24  ;;  %v2714_v31 = vadd.f32 %v2664_v54, %v1118_v26  ;;  %v2778_v18 = vadd.f32 %v2664_v54, %v1182_v2 }
 0x27c   : > { %v1983_v29 = vpop.f32.mrf.mxu0  ;;  %v1999_v9 = vpop.f32.mrf.mxu1 }
 0x27d   : > { %v1207_v32 = vadd.f32 %v1206_v28, %v2710_v27  ;;  %v2726_v39 = vadd.f32 %v1983_v29, %v2664_v54  ;;  %v2790_v26 = vadd.f32 %v1999_v9, %v2664_v54 }
 0x27e   : > { %v1121_v33 = vpop.f32.mrf.mxu0  ;;  %v1185_v16 = vpop.f32.mrf.mxu1 }
 0x27f   : > { %v1208_v34 = vadd.f32 %v1207_v32, %v2714_v31  ;;  %v2719_v35 = vadd.f32 %v2664_v54, %v1121_v33  ;;  %v2783_v22 = vadd.f32 %v2664_v54, %v1185_v16 }
 0x281   : > { %v1209_v38 = vadd.f32 %v1208_v34, %v2719_v35 }
 0x283   : > { %v1210_v40 = vadd.f32 %v1209_v38, %v2722_v37 }
 0x285   : > { %v1211_v43 = vadd.f32 %v1210_v40, %v2726_v39 }
 0x287   : > { %v1212_v45 = vadd.f32 %v1211_v43, %v2730_v42 }
 0x289   : > { %v1213_v48 = vadd.f32 %v1212_v45, %v2734_v44 }
 0x28b   : > { %v1214_v51 = vadd.f32 %v1213_v48, %v2738_v47 }
 0x28d   : > { %v1215_v55 = vadd.f32 %v1214_v51, %v2742_v49 }
 0x28f   : > { %v1216_v58 = vadd.f32 %v1215_v55, %v2746_v53 }
 0x291   : > { %v1217_v59 = vadd.f32 %v1216_v58, %v2751_v61 }
 0x293   : > { %v1218_v1 = vadd.f32 %v1217_v59, %v2754_v62 }
 0x295   : > { %v1219_v5 = vadd.f32 %v1218_v1, %v2758_v0 }
 0x297   : > { %v1220_v6 = vadd.f32 %v1219_v5, %v2762_v4 }
 0x299   : > { %v1221_v12 = vadd.f32 %v1220_v6, %v2767_v8 }
 0x29b   : > { %v1222_v15 = vadd.f32 %v1221_v12, %v2770_v11 }
 0x29d   : > { %v1223_v19 = vadd.f32 %v1222_v15, %v2774_v14 }
 0x29f   : > { %v1224_v20 = vadd.f32 %v1223_v19, %v2778_v18 }
 0x2a1   : > { %v1225_v25 = vadd.f32 %v1224_v20, %v2783_v22 }
 0x2a3   : > { %v1226_v28 = vadd.f32 %v1225_v25, %v2786_v23 }
 0x2a5   : > { %v1227_v29 = vadd.f32 %v1226_v28, %v2790_v26 }
 0x2a7   : > { %v1228_v30 = vrot.slane %v1227_v29, 4 }
 0x2a9   : > { %v1229_v32 = vadd.f32 %v1228_v30, %v1227_v29 }
 0x2ab   : > { %v1230_v33 = vrot.slane %v1229_v32, 2 }
 0x2ad   : > { %v1231_v34 = vadd.f32 %v1230_v33, %v1229_v32 }
 0x2af   : > { %v1232_v36 = vrot.slane %v1231_v34, 1 }
 0x2b1   : > { %v1233_v38 = vadd.f32 %v1232_v36, %v1231_v34 }
 0x2b3   : > { %v2794_v40 = vmul.f32 0.00390625, %v1233_v38 }
 0x2b5   : > { %v2798_v41 = vsub.f32 %v2667_v56, %v2794_v40  ;;  %v2802_v54 = vsub.f32 %v2670_v57, %v2794_v40  ;;  %v2806_v43 = vsub.f32 %v2673_v60, %v2794_v40  ;;  %v2814_v48 = vsub.f32 %v2678_v63, %v2794_v40 }
 0x2b6   : > { %v2818_v56 = vsub.f32 %v2682_v3, %v2794_v40  ;;  %v2824_v60 = vsub.f32 %v2687_v7, %v2794_v40  ;;  %v2830_v63 = vsub.f32 %v2690_v10, %v2794_v40  ;;  %v2836_v50 = vsub.f32 %v2694_v13, %v2794_v40 }
 0x2b7   : > { %v1268_v45 = vmul.f32 %v2798_v41, %v2798_v41  ;;  %v1269_v46 = vmul.f32 %v2802_v54, %v2802_v54  ;;  %v1270_v57 = vmul.f32 %v2806_v43, %v2806_v43  ;;  %v1271_v52 = vmul.f32 %v2814_v48, %v2814_v48 }
 0x2b8   : > { %v1272_v3 = vmul.f32 %v2818_v56, %v2818_v56  ;;  %v1273_v7 = vmul.f32 %v2824_v60, %v2824_v60  ;;  %v2842_v1 = vsub.f32 %v2698_v17, %v2794_v40  ;;  %v1274_v10 = vmul.f32 %v2830_v63, %v2830_v63 }
 0x2b9   : > { %v1300_v51 = vadd.f32 %v1269_v46, %v1268_v45  ;;  %v2848_v5 = vsub.f32 %v2703_v21, %v2794_v40  ;;  %v1275_v13 = vmul.f32 %v2836_v50, %v2836_v50  ;;  %v2854_v9 = vsub.f32 %v2706_v24, %v2794_v40 }
 0x2ba   : > { %v1276_v17 = vmul.f32 %v2842_v1, %v2842_v1  ;;  %v2860_v15 = vsub.f32 %v2710_v27, %v2794_v40  ;;  %v2866_v19 = vsub.f32 %v2714_v31, %v2794_v40  ;;  %v2872_v25 = vsub.f32 %v2719_v35, %v2794_v40 }
 0x2bb   : > { %v1301_v55 = vadd.f32 %v1300_v51, %v1270_v57  ;;  %v1277_v21 = vmul.f32 %v2848_v5, %v2848_v5  ;;  %v1278_v24 = vmul.f32 %v2854_v9, %v2854_v9  ;;  %v2878_v29 = vsub.f32 %v2722_v37, %v2794_v40 }
 0x2bc   : > { %v1279_v27 = vmul.f32 %v2860_v15, %v2860_v15  ;;  %v1280_v31 = vmul.f32 %v2866_v19, %v2866_v19  ;;  %v2884_v32 = vsub.f32 %v2726_v39, %v2794_v40  ;;  %v1281_v35 = vmul.f32 %v2872_v25, %v2872_v25 }
 0x2bd   : > { %v1302_v58 = vadd.f32 %v1301_v55, %v1271_v52  ;;  %v2890_v34 = vsub.f32 %v2730_v42, %v2794_v40  ;;  %v1282_v37 = vmul.f32 %v2878_v29, %v2878_v29  ;;  %v2896_v38 = vsub.f32 %v2734_v44, %v2794_v40 }
 0x2be   : > { %v1283_v39 = vmul.f32 %v2884_v32, %v2884_v32  ;;  %v2902_v46 = vsub.f32 %v2738_v47, %v2794_v40  ;;  %v2908_v51 = vsub.f32 %v2742_v49, %v2794_v40  ;;  %v2914_v55 = vsub.f32 %v2746_v53, %v2794_v40 }
 0x2bf   : > { %v1303_v59 = vadd.f32 %v1302_v58, %v1272_v3  ;;  %v1284_v42 = vmul.f32 %v2890_v34, %v2890_v34  ;;  %v1285_v44 = vmul.f32 %v2896_v38, %v2896_v38  ;;  %v2920_v58 = vsub.f32 %v2751_v61, %v2794_v40 }
 0x2c0   : > { %v1286_v47 = vmul.f32 %v2902_v46, %v2902_v46  ;;  %v1287_v49 = vmul.f32 %v2908_v51, %v2908_v51  ;;  %v1288_v53 = vmul.f32 %v2914_v55, %v2914_v55 }
 0x2c1   : > { %v1304_v2 = vadd.f32 %v1303_v59, %v1273_v7  ;;  %v2926_v59 = vsub.f32 %v2754_v62, %v2794_v40  ;;  %v1289_v61 = vmul.f32 %v2920_v58, %v2920_v58 }
 0x2c3   : > { %v1305_v6 = vadd.f32 %v1304_v2, %v1274_v10  ;;  %v2932_v2 = vsub.f32 %v2758_v0, %v2794_v40  ;;  %v1290_v62 = vmul.f32 %v2926_v59, %v2926_v59 }
 0x2c5   : > { %v1306_v12 = vadd.f32 %v1305_v6, %v1275_v13  ;;  %v2938_v6 = vsub.f32 %v2762_v4, %v2794_v40  ;;  %v1291_v0 = vmul.f32 %v2932_v2, %v2932_v2 }
 0x2c7   : > { %v1307_v16 = vadd.f32 %v1306_v12, %v1276_v17  ;;  %v2944_v12 = vsub.f32 %v2767_v8, %v2794_v40  ;;  %v1292_v4 = vmul.f32 %v2938_v6, %v2938_v6 }
 0x2c9   : > { %v1308_v20 = vadd.f32 %v1307_v16, %v1277_v21  ;;  %v2950_v16 = vsub.f32 %v2770_v11, %v2794_v40  ;;  %v1293_v8 = vmul.f32 %v2944_v12, %v2944_v12 }
 0x2cb   : > { %v1309_v28 = vadd.f32 %v1308_v20, %v1278_v24  ;;  %v2956_v20 = vsub.f32 %v2774_v14, %v2794_v40  ;;  %v1294_v11 = vmul.f32 %v2950_v16, %v2950_v16 }
 0x2cd   : > { %v1310_v30 = vadd.f32 %v1309_v28, %v1279_v27  ;;  %v2962_v28 = vsub.f32 %v2778_v18, %v2794_v40  ;;  %v1295_v14 = vmul.f32 %v2956_v20, %v2956_v20 }
 0x2cf   : > { %v1311_v33 = vadd.f32 %v1310_v30, %v1280_v31  ;;  %v2968_v30 = vsub.f32 %v2783_v22, %v2794_v40  ;;  %v1296_v18 = vmul.f32 %v2962_v28, %v2962_v28 }
 0x2d1   : > { %v1312_v36 = vadd.f32 %v1311_v33, %v1281_v35  ;;  %v2974_v33 = vsub.f32 %v2786_v23, %v2794_v40  ;;  %v1297_v22 = vmul.f32 %v2968_v30, %v2968_v30 }
 0x2d3   : > { %v1313_v45 = vadd.f32 %v1312_v36, %v1282_v37  ;;  %v2980_v36 = vsub.f32 %v2790_v26, %v2794_v40 }
 0x2d5   : > { %v1314_v57 = vadd.f32 %v1313_v45, %v1283_v39  ;;  %v1298_v45 = vmul.f32 %v2974_v33, %v2974_v33  ;;  %v1299_v23 = vmul.f32 %v2980_v36, %v2980_v36 }
 0x2d7   : > { %v1315_v52 = vadd.f32 %v1314_v57, %v1284_v42 }
 0x2d9   : > { %v1316_v3 = vadd.f32 %v1315_v52, %v1285_v44 }
 0x2db   : > { %v1317_v7 = vadd.f32 %v1316_v3, %v1286_v47 }
 0x2dd   : > { %v1318_v10 = vadd.f32 %v1317_v7, %v1287_v49 }
 0x2df   : > { %v1319_v13 = vadd.f32 %v1318_v10, %v1288_v53 }
 0x2e1   : > { %v1320_v17 = vadd.f32 %v1319_v13, %v1289_v61 }
 0x2e3   : > { %v1321_v21 = vadd.f32 %v1320_v17, %v1290_v62  ;;  %v2997_v62 = vld [vmem:[%s3287_s4] ss:$0 sm:$0xff] }
 0x2e5   : > { %v1322_v24 = vadd.f32 %v1321_v21, %v1291_v0 }
 0x2e7   : > { %v1323_v27 = vadd.f32 %v1322_v24, %v1292_v4 }
 0x2e9   : > { %v1324_v31 = vadd.f32 %v1323_v27, %v1293_v8 }
 0x2eb   : > { %v1325_v35 = vadd.f32 %v1324_v31, %v1294_v11 }
 0x2ed   : > { %v1326_v37 = vadd.f32 %v1325_v35, %v1295_v14 }
 0x2ef   : > { %v1327_v39 = vadd.f32 %v1326_v37, %v1296_v18 }
 0x2f1   : > { %v1328_v42 = vadd.f32 %v1327_v39, %v1297_v22 }
 0x2f3   : > { %v1329_v57 = vadd.f32 %v1328_v42, %v1298_v45 }
 0x2f5   : > { %v1330_v44 = vadd.f32 %v1329_v57, %v1299_v23 }
 0x2f7   : > { %v1331_v52 = vrot.slane %v1330_v44, 4 }
 0x2f9   : > { %v1332_v47 = vadd.f32 %v1331_v52, %v1330_v44  ;;  %v3084_v44 = vld [vmem:[#allocation9] sm:$0xff] }
 0x2fa   : > { %vm1514_vm0 = vcmp.ge.u32.totalorder %v3084_v44, 2147483648 }
 0x2fb   : > { %v1333_v3 = vrot.slane %v1332_v47, 2 }
 0x2fd   : > { %v1334_v49 = vadd.f32 %v1333_v3, %v1332_v47  ;;  %v3090_v3 = vld [vmem:[#allocation9 + $0x8] sm:$0xff] }
 0x2fe   : > { %vm1515_vm1 = vcmp.ge.u32.totalorder %v3090_v3, 2147483648 }
 0x2ff   : > { %v1335_v7 = vrot.slane %v1334_v49, 1 }
 0x301   : > { %v1336_v26 = vadd.f32 %v1335_v7, %v1334_v49 }
 0x303   : > { %v1337_v40 = vmul.f32 0.00390625, %v1336_v26  ;;  %v3096_v26 = vld [vmem:[#allocation9 + $0x10] sm:$0xff] }
 0x304   : > { %vm1516_vm2 = vcmp.ge.u32.totalorder %v3096_v26, 2147483648 }
 0x305   : > { %v1338_v53 = vadd.f32 1e-05, %v1337_v40 }
 0x307   : > { %2159 = vrsqrt.f32 %v1338_v53 }
 0x314   : > { %v2988_v10 = vpop.eup %2159 }
 0x315   : > { %v1340_v61 = vmul.f32 %v2988_v10, %v2798_v41  ;;  %v1341_v13 = vmul.f32 %v2988_v10, %v2802_v54  ;;  %v1342_v17 = vmul.f32 %v2988_v10, %v2806_v43  ;;  %v1343_v0 = vmul.f32 %v2988_v10, %v2814_v48 }
 0x316   : > { %v1344_v21 = vmul.f32 %v2988_v10, %v2818_v56  ;;  %v1345_v41 = vmul.f32 %v2988_v10, %v2824_v60  ;;  %v1346_v54 = vmul.f32 %v2988_v10, %v2830_v63  ;;  %v1347_v4 = vmul.f32 %v2988_v10, %v2836_v50  ;;  %v3024_v63 = vld [vmem:[%s3322_s13] ss:$0 sm:$0xff] }
 0x317   : > { %v1348_v24 = vmul.f32 %v2988_v10, %v2842_v1  ;;  %v1379_v43 = vmul.f32 %v2997_v62, %v1340_v61  ;;  %v1349_v48 = vmul.f32 %v2988_v10, %v2848_v5  ;;  %v1350_v56 = vmul.f32 %v2988_v10, %v2854_v9  ;;  %v3104_v61 = vld [vmem:[#allocation9 + $0x18] sm:$0xff] }
 0x318   : > { %v1351_v60 = vmul.f32 %v2988_v10, %v2860_v15  ;;  %v1380_v8 = vmul.f32 %v2997_v62, %v1341_v13  ;;  %v1352_v50 = vmul.f32 %v2988_v10, %v2866_v19  ;;  %v1353_v1 = vmul.f32 %v2988_v10, %v2872_v25 }
 0x319   : > { %v1354_v5 = vmul.f32 %v2988_v10, %v2878_v29  ;;  %v1381_v9 = vmul.f32 %v2997_v62, %v1342_v17  ;;  %v1355_v15 = vmul.f32 %v2988_v10, %v2884_v32  ;;  %v1356_v27 = vmul.f32 %v2988_v10, %v2890_v34 }
 0x31a   : > { %v1357_v11 = vmul.f32 %v2988_v10, %v2896_v38  ;;  %v1382_v31 = vmul.f32 %v2997_v62, %v1343_v0  ;;  %v1358_v19 = vmul.f32 %v2988_v10, %v2902_v46  ;;  %v1359_v25 = vmul.f32 %v2988_v10, %v2908_v51  ;;  %v3110_v0 = vld [vmem:[#allocation9 + $0x20] sm:$0xff] }
 0x31b   : > { %v1383_v29 = vmul.f32 %v2997_v62, %v1344_v21  ;;  %v1418_v14 = vadd.f32 %v3024_v63, %v1379_v43  ;;  %v1360_v32 = vmul.f32 %v2988_v10, %v2914_v55  ;;  %v1361_v34 = vmul.f32 %v2988_v10, %v2920_v58  ;;  %v3122_v43 = vld [vmem:[#allocation9 + $0x30] sm:$0xff] }
 0x31c   : > { %v1384_v38 = vmul.f32 %v2997_v62, %v1345_v41  ;;  %v1419_v35 = vadd.f32 %v3024_v63, %v1380_v8  ;;  %v1362_v46 = vmul.f32 %v2988_v10, %v2926_v59  ;;  %v1363_v51 = vmul.f32 %v2988_v10, %v2932_v2  ;;  %v3116_v41 = vld [vmem:[#allocation9 + $0x28] sm:$0xff]  ;;  %v3128_v8 = vld [vmem:[#allocation9 + $0x38] sm:$0xff] }
 0x31d   : > { %v1385_v18 = vmul.f32 %v2997_v62, %v1346_v54  ;;  %v1420_v37 = vadd.f32 %v3024_v63, %v1381_v9  ;;  %v3060_v55 = vmul.f32 %v2988_v10, %v2938_v6  ;;  %v3064_v58 = vmul.f32 %v2988_v10, %v2944_v12  ;;  %v3134_v9 = vld [vmem:[#allocation9 + $0x40] sm:$0xff] }
 0x31e   : > { %v1386_v22 = vmul.f32 %v2997_v62, %v1347_v4  ;;  %v1421_v39 = vadd.f32 %v3024_v63, %v1382_v31  ;;  %v3070_v59 = vmul.f32 %v2988_v10, %v2950_v16  ;;  %v1387_v2 = vmul.f32 %v2997_v62, %v1348_v24  ;;  %v3144_v31 = vld [vmem:[#allocation9 + $0x48] sm:$0xff] }
 0x31f   : > { %v1422_v45 = vadd.f32 %v3024_v63, %v1383_v29  ;;  %2161 = vtanh.f32 %v1418_v14  ;;  %v1367_v6 = vmul.f32 %v2988_v10, %v2956_v20  ;;  %v1388_v42 = vmul.f32 %v2997_v62, %v1349_v48  ;;  %v3155_v14 = vld [vmem:[#allocation9 + $0x50] sm:$0xff] }
 0x320   : > { %v1423_v12 = vadd.f32 %v3024_v63, %v1384_v38  ;;  %2163 = vtanh.f32 %v1419_v35  ;;  %v3080_v23 = vmul.f32 %v2988_v10, %v2962_v28  ;;  %v1389_v16 = vmul.f32 %v2997_v62, %v1350_v56 }
 0x321   : > { %v1424_v57 = vadd.f32 %v3024_v63, %v1385_v18  ;;  %2165 = vtanh.f32 %v1420_v37  ;;  %v1369_v52 = vmul.f32 %v2988_v10, %v2968_v30  ;;  %v1390_v20 = vmul.f32 %v2997_v62, %v1351_v60 }
 0x322   : > { %v1425_v47 = vadd.f32 %v3024_v63, %v1386_v22  ;;  %2167 = vtanh.f32 %v1421_v39  ;;  %v1370_v28 = vmul.f32 %v2988_v10, %v2974_v33  ;;  %v1391_v49 = vmul.f32 %v2997_v62, %v1352_v50 }
 0x323   : > { %v1426_v7 = vadd.f32 %v3024_v63, %v1387_v2  ;;  %2169 = vtanh.f32 %v1422_v45  ;;  %v3100_v30 = vmul.f32 %v2988_v10, %v2980_v36  ;;  %v1392_v40 = vmul.f32 %v2997_v62, %v1353_v1  ;;  %v3181_v2 = vld [vmem:[#allocation9 + $0x68] sm:$0xff] }
 0x324   : > { %v1427_v53 = vadd.f32 %v3024_v63, %v1388_v42  ;;  %2171 = vtanh.f32 %v1423_v12  ;;  %v1393_v33 = vmul.f32 %v2997_v62, %v1354_v5  ;;  %v1394_v13 = vmul.f32 %v2997_v62, %v1355_v15  ;;  %v3185_v12 = vld [vmem:[#allocation9 + $0x70] sm:$0xff] }
 0x325   : > { %v1428_v17 = vadd.f32 %v3024_v63, %v1389_v16  ;;  %2173 = vtanh.f32 %v1424_v57  ;;  %v1395_v36 = vmul.f32 %v2997_v62, %v1356_v27  ;;  %v1396_v10 = vmul.f32 %v2997_v62, %v1357_v11 }
 0x326   : > { %v1429_v21 = vadd.f32 %v3024_v63, %v1390_v20  ;;  %2175 = vtanh.f32 %v1425_v47  ;;  %v1397_v54 = vmul.f32 %v2997_v62, %v1358_v19  ;;  %v1398_v4 = vmul.f32 %v2997_v62, %v1359_v25 }
 0x327   : > { %v1430_v24 = vadd.f32 %v3024_v63, %v1391_v49  ;;  %2177 = vtanh.f32 %v1426_v7  ;;  %vm1517_vm3 = vcmp.ge.u32.totalorder %v3104_v61, 2147483648  ;;  %v1399_v48 = vmul.f32 %v2997_v62, %v1360_v32 }
 0x328   : > { %v1400_v56 = vmul.f32 %v2997_v62, %v1361_v34  ;;  %v1431_v60 = vadd.f32 %v3024_v63, %v1392_v40  ;;  %2179 = vtanh.f32 %v1427_v53  ;;  %vm1518_vm4 = vcmp.ge.u32.totalorder %v3110_v0, 2147483648 }
 0x329   : > { %v1401_v50 = vmul.f32 %v2997_v62, %v1362_v46  ;;  %v1402_v1 = vmul.f32 %v2997_v62, %v1363_v51  ;;  %v1432_v5 = vadd.f32 %v3024_v63, %v1393_v33  ;;  %2181 = vtanh.f32 %v1428_v17  ;;  %v3166_v46 = vld [vmem:[#allocation9 + $0x58] sm:$0xff] }
 0x32a   : > { %vm1519_vm5 = vcmp.ge.u32.totalorder %v3116_v41, 2147483648  ;;  %v1403_v15 = vmul.f32 %v2997_v62, %v3060_v55  ;;  %v3141_v27 = vmul.f32 %v2997_v62, %v3064_v58  ;;  %v1433_v11 = vadd.f32 %v3024_v63, %v1394_v13  ;;  %v3173_v55 = vld [vmem:[#allocation9 + $0x60] sm:$0xff] }
 0x32b   : > { %2183 = vtanh.f32 %v1429_v21  ;;  %vm1520_vm6 = vcmp.ge.u32.totalorder %v3122_v43, 2147483648  ;;  %v3149_v19 = vmul.f32 %v2997_v62, %v3070_v59  ;;  %v3152_v25 = vmul.f32 %v2997_v62, %v1367_v6 }
 0x32c   : > { %v1434_v29 = vadd.f32 %v3024_v63, %v1395_v36  ;;  %2185 = vtanh.f32 %v1430_v24  ;;  %vm1521_vm7 = vcmp.ge.u32.totalorder %v3128_v8, 2147483648  ;;  %v2162_v32 = vpop.eup %2161  ;;  %v3160_v34 = vmul.f32 %v2997_v62, %v3080_v23 }
 0x32d   : > { %v3163_v38 = vmul.f32 %v2997_v62, %v1369_v52  ;;  %v1435_v35 = vadd.f32 %v3024_v63, %v1396_v10  ;;  %2187 = vtanh.f32 %v1431_v60  ;;  %vm1522_vm8 = vcmp.ge.u32.totalorder %v3134_v9, 2147483648  ;;  %v2164_v51 = vpop.eup %2163 }
 0x32e   : > { %v3170_v18 = vmul.f32 %v2997_v62, %v1370_v28  ;;  %v1436_v37 = vadd.f32 %v3024_v63, %v1397_v54  ;;  %2189 = vtanh.f32 %v1432_v5  ;;  %vm1523_vm9 = vcmp.ge.u32.totalorder %v3144_v31, 2147483648  ;;  %v2166_v22 = vpop.eup %2165 }
 0x32f   : > { %v1546_v58 = vmul.f32 2.0, %v2162_v32  ;;  %v3178_v39 = vmul.f32 %v2997_v62, %v3100_v30  ;;  %v1437_v59 = vadd.f32 %v3024_v63, %v1398_v4  ;;  %2191 = vtanh.f32 %v1433_v11  ;;  %v2168_v6 = vpop.eup %2167 }
 0x330   : > { %vm1524_vm10 = vcmp.ge.u32.totalorder %v3155_v14, 2147483648  ;;  %v1547_v45 = vmul.f32 2.0, %v2164_v51  ;;  %v1438_v42 = vadd.f32 %v3024_v63, %v1399_v48  ;;  %2193 = vtanh.f32 %v1434_v29  ;;  %v2170_v16 = vpop.eup %2169  ;;  %v1498_v29 = vld [vmem:[#allocation9 + $0x80] sm:$0xff] }
 0x331   : > { %vm1525_vm11 = vcmp.ge.u32.totalorder %v3166_v46, 2147483648  ;;  %v1548_v23 = vmul.f32 2.0, %v2166_v22  ;;  %v1578_v62 = vsel %vm1514_vm0, %v1546_v58, 0.0  ;;  %v1439_v57 = vadd.f32 %v3024_v63, %v1400_v56  ;;  %v2172_v47 = vpop.eup %2171 }
 0x332   : > { %2195 = vtanh.f32 %v1435_v35  ;;  %vm1526_vm12 = vcmp.ge.u32.totalorder %v3173_v55, 2147483648  ;;  %v1549_v52 = vmul.f32 2.0, %v2168_v6  ;;  %v1579_v20 = vsel %vm1515_vm1, %v1547_v45, 0.0  ;;  %1610 = vst [vmem:[#allocation11] sm:$0xff] %v1578_v62  ;;  %v2174_v7 = vpop.eup %2173  ;;  %v1499_v35 = vld [vmem:[#allocation9 + $0x88] sm:$0xff]  ;;  %v1502_v45 = vld [vmem:[#allocation9 + $0xa0] sm:$0xff] }
 0x333   : > { %v1440_v28 = vadd.f32 %v3024_v63, %v1401_v50  ;;  %2197 = vtanh.f32 %v1436_v37  ;;  %vm1527_vm13 = vcmp.ge.u32.totalorder %v3181_v2, 2147483648  ;;  %v1550_v49 = vmul.f32 2.0, %v2170_v16  ;;  %1611 = vst [vmem:[#allocation11 + $0x8] sm:$0xff] %v1579_v20  ;;  %v2176_v53 = vpop.eup %2175 }
 0x334   : > { %v1580_v44 = vsel %vm1516_vm2, %v1548_v23, 0.0  ;;  %v1441_v30 = vadd.f32 %v3024_v63, %v1402_v1  ;;  %2199 = vtanh.f32 %v1437_v59  ;;  %vm1528_vm14 = vcmp.ge.u32.totalorder %v3185_v12, 2147483648  ;;  %v2178_v17 = vpop.eup %2177  ;;  %v1501_v59 = vld [vmem:[#allocation9 + $0x98] sm:$0xff]  ;;  %v1503_v23 = vld [vmem:[#allocation9 + $0xa8] sm:$0xff] }
 0x335   : > { %v1551_v3 = vmul.f32 2.0, %v2172_v47  ;;  %v1581_v40 = vsel %vm1517_vm3, %v1549_v52, 0.0  ;;  %1612 = vst [vmem:[#allocation11 + $0x10] sm:$0xff] %v1580_v44  ;;  %v1442_v33 = vadd.f32 %v3024_v63, %v1403_v15  ;;  %2201 = vtanh.f32 %v1438_v42  ;;  %v2180_v21 = vpop.eup %2179 }
 0x336   : > { %v1552_v13 = vmul.f32 2.0, %v2174_v7  ;;  %v1582_v26 = vsel %vm1518_vm4, %v1550_v49, 0.0  ;;  %1613 = vst [vmem:[#allocation11 + $0x18] sm:$0xff] %v1581_v40  ;;  %v1443_v36 = vadd.f32 %v3024_v63, %v3141_v27  ;;  %2203 = vtanh.f32 %v1439_v57  ;;  %v2182_v24 = vpop.eup %2181  ;;  %v1497_v27 = vld [vmem:[#allocation9 + $0x78] sm:$0xff]  ;;  %v1504_v57 = vld [vmem:[#allocation9 + $0xb0] sm:$0xff]  ;;  %v1506_v7 = vld [vmem:[#allocation9 + $0xc0] sm:$0xff] }
 0x337   : > { %v1553_v10 = vmul.f32 2.0, %v2176_v53  ;;  %v1583_v61 = vsel %vm1519_vm5, %v1551_v3, 0.0  ;;  %1614 = vst [vmem:[#allocation11 + $0x20] sm:$0xff] %v1582_v26  ;;  %v1444_v54 = vadd.f32 %v3024_v63, %v3149_v19  ;;  %2205 = vtanh.f32 %v1440_v28  ;;  %v1505_v28 = vld [vmem:[#allocation9 + $0xb8] sm:$0xff]  ;;  %v1507_v53 = vld [vmem:[#allocation9 + $0xc8] sm:$0xff] }
 0x338   : > { %v1554_v4 = vmul.f32 2.0, %v2178_v17  ;;  %v1584_v0 = vsel %vm1520_vm6, %v1552_v13, 0.0  ;;  %1615 = vst [vmem:[#allocation11 + $0x28] sm:$0xff] %v1583_v61  ;;  %v1445_v48 = vadd.f32 %v3024_v63, %v3152_v25  ;;  %2207 = vtanh.f32 %v1441_v30  ;;  %v2184_v60 = vpop.eup %2183  ;;  %v1508_v17 = vld [vmem:[#allocation9 + $0xd0] sm:$0xff] }
 0x339   : > { %v1555_v56 = vmul.f32 2.0, %v2180_v21  ;;  %v1585_v41 = vsel %vm1521_vm7, %v1553_v10, 0.0  ;;  %1616 = vst [vmem:[#allocation11 + $0x30] sm:$0xff] %v1584_v0  ;;  %v1446_v50 = vadd.f32 %v3024_v63, %v3160_v34  ;;  %2209 = vtanh.f32 %v1442_v33  ;;  %v2186_v5 = vpop.eup %2185  ;;  %v1509_v21 = vld [vmem:[#allocation9 + $0xd8] sm:$0xff] }
 0x33a   : > { %v1556_v1 = vmul.f32 2.0, %v2182_v24  ;;  %v1586_v43 = vsel %vm1522_vm8, %v1554_v4, 0.0  ;;  %1617 = vst [vmem:[#allocation11 + $0x38] sm:$0xff] %v1585_v41  ;;  %v1447_v15 = vadd.f32 %v3024_v63, %v3163_v38  ;;  %2211 = vtanh.f32 %v1443_v36  ;;  %v2188_v19 = vpop.eup %2187  ;;  %v1510_v24 = vld [vmem:[#allocation9 + $0xe0] sm:$0xff] }
 0x33b   : > { %v1557_v11 = vmul.f32 2.0, %v2184_v60  ;;  %v1587_v8 = vsel %vm1523_vm9, %v1555_v56, 0.0  ;;  %1618 = vst [vmem:[#allocation11 + $0x40] sm:$0xff] %v1586_v43  ;;  %v1448_v25 = vadd.f32 %v3024_v63, %v3170_v18  ;;  %2213 = vtanh.f32 %v1444_v54  ;;  %v2190_v34 = vpop.eup %2189  ;;  %v1500_v18 = vld [vmem:[#allocation9 + $0x90] sm:$0xff]  ;;  %v1511_v60 = vld [vmem:[#allocation9 + $0xe8] sm:$0xff] }
 0x33c   : > { %v1558_v9 = vmul.f32 2.0, %v2186_v5  ;;  %v1588_v32 = vsel %vm1524_vm10, %v1556_v1, 0.0  ;;  %1619 = vst [vmem:[#allocation11 + $0x48] sm:$0xff] %v1587_v8  ;;  %v1449_v38 = vadd.f32 %v3024_v63, %v3178_v39  ;;  %2215 = vtanh.f32 %v1445_v48  ;;  %v2192_v37 = vpop.eup %2191  ;;  %v1512_v5 = vld [vmem:[#allocation9 + $0xf0] sm:$0xff]  ;;  %v1513_v8 = vld [vmem:[#allocation9 + $0xf8] sm:$0xff] }
 0x33d   : > { %v1559_v31 = vmul.f32 2.0, %v2188_v19  ;;  %v1589_v51 = vsel %vm1525_vm11, %v1557_v11, 0.0  ;;  %1620 = vst [vmem:[#allocation11 + $0x50] sm:$0xff] %v1588_v32  ;;  %2217 = vtanh.f32 %v1446_v50  ;;  %vm1529_vm15 = vcmp.ge.u32.totalorder %v1497_v27, 2147483648  ;;  %v2194_v22 = vpop.eup %2193 }
 0x33e   : > { %v1560_v58 = vmul.f32 2.0, %v2190_v34  ;;  %v1590_v14 = vsel %vm1526_vm12, %v1558_v9, 0.0  ;;  %1621 = vst [vmem:[#allocation11 + $0x58] sm:$0xff] %v1589_v51  ;;  %2219 = vtanh.f32 %v1447_v15  ;;  %vm1530_vm0 = vcmp.ge.u32.totalorder %v1498_v29, 2147483648 }
 0x33f   : > { %v1561_v63 = vmul.f32 2.0, %v2192_v37  ;;  %v1591_v39 = vsel %vm1527_vm13, %v1559_v31, 0.0  ;;  %1622 = vst [vmem:[#allocation11 + $0x60] sm:$0xff] %v1590_v14  ;;  %v2196_v46 = vpop.eup %2195  ;;  %2221 = vtanh.f32 %v1448_v25  ;;  %vm1531_vm1 = vcmp.ge.u32.totalorder %v1499_v35, 2147483648 }
 0x340   : > { %v1562_v6 = vmul.f32 2.0, %v2194_v22  ;;  %v1592_v42 = vsel %vm1528_vm14, %v1560_v58, 0.0  ;;  %1623 = vst [vmem:[#allocation11 + $0x68] sm:$0xff] %v1591_v39  ;;  %v2198_v55 = vpop.eup %2197  ;;  %2223 = vtanh.f32 %v1449_v38  ;;  %vm1532_vm2 = vcmp.ge.u32.totalorder %v1500_v18, 2147483648 }
 0x341   : > { %v1563_v62 = vmul.f32 2.0, %v2196_v46  ;;  %v1593_v16 = vsel %vm1529_vm15, %v1561_v63, 0.0  ;;  %1624 = vst [vmem:[#allocation11 + $0x70] sm:$0xff] %v1592_v42  ;;  %v2200_v2 = vpop.eup %2199  ;;  %vm1533_vm3 = vcmp.ge.u32.totalorder %v1501_v59, 2147483648  ;;  %v1564_v52 = vmul.f32 2.0, %v2198_v55 }
 0x342   : > { %v1594_v20 = vsel %vm1530_vm0, %v1562_v6, 0.0  ;;  %1625 = vst [vmem:[#allocation11 + $0x78] sm:$0xff] %v1593_v16  ;;  %v2202_v47 = vpop.eup %2201  ;;  %vm1534_vm4 = vcmp.ge.u32.totalorder %v1502_v45, 2147483648  ;;  %v1565_v12 = vmul.f32 2.0, %v2200_v2  ;;  %vm1535_vm5 = vcmp.ge.u32.totalorder %v1503_v23, 2147483648 }
 0x343   : > { %v1595_v49 = vsel %vm1531_vm1, %v1563_v62, 0.0  ;;  %1626 = vst [vmem:[#allocation11 + $0x80] sm:$0xff] %v1594_v20  ;;  %v2204_v44 = vpop.eup %2203  ;;  %v1566_v30 = vmul.f32 2.0, %v2202_v47  ;;  %v1596_v3 = vsel %vm1532_vm2, %v1564_v52, 0.0  ;;  %vm1536_vm6 = vcmp.ge.u32.totalorder %v1504_v57, 2147483648 }
 0x344   : > { %1627 = vst [vmem:[#allocation11 + $0x88] sm:$0xff] %v1595_v49  ;;  %v2206_v40 = vpop.eup %2205  ;;  %v1567_v33 = vmul.f32 2.0, %v2204_v44  ;;  %v1597_v13 = vsel %vm1533_vm3, %v1565_v12, 0.0  ;;  %1628 = vst [vmem:[#allocation11 + $0x90] sm:$0xff] %v1596_v3  ;;  %vm1537_vm7 = vcmp.ge.u32.totalorder %v1505_v28, 2147483648  ;;  %vm1538_vm8 = vcmp.ge.u32.totalorder %v1506_v7, 2147483648 }
 0x345   : > { %v2208_v26 = vpop.eup %2207  ;;  %v1568_v36 = vmul.f32 2.0, %v2206_v40  ;;  %v1598_v10 = vsel %vm1534_vm4, %v1566_v30, 0.0  ;;  %1629 = vst [vmem:[#allocation11 + $0x98] sm:$0xff] %v1597_v13  ;;  %vm1539_vm9 = vcmp.ge.u32.totalorder %v1507_v53, 2147483648  ;;  %vm1540_vm10 = vcmp.ge.u32.totalorder %v1508_v17, 2147483648 }
 0x346   : > { %v2210_v61 = vpop.eup %2209  ;;  %v1569_v54 = vmul.f32 2.0, %v2208_v26  ;;  %v1599_v4 = vsel %vm1535_vm5, %v1567_v33, 0.0  ;;  %1630 = vst [vmem:[#allocation11 + $0xa0] sm:$0xff] %v1598_v10  ;;  %vm1541_vm11 = vcmp.ge.u32.totalorder %v1509_v21, 2147483648  ;;  %vm1542_vm12 = vcmp.ge.u32.totalorder %v1510_v24, 2147483648 }
 0x347   : > { %v2212_v0 = vpop.eup %2211  ;;  %v1570_v48 = vmul.f32 2.0, %v2210_v61  ;;  %v1600_v56 = vsel %vm1536_vm6, %v1568_v36, 0.0  ;;  %1631 = vst [vmem:[#allocation11 + $0xa8] sm:$0xff] %v1599_v4  ;;  %vm1543_vm13 = vcmp.ge.u32.totalorder %v1511_v60, 2147483648  ;;  %vm1544_vm14 = vcmp.ge.u32.totalorder %v1512_v5, 2147483648 }
 0x348   : > { %v2214_v41 = vpop.eup %2213  ;;  %v1571_v50 = vmul.f32 2.0, %v2212_v0  ;;  %v1601_v1 = vsel %vm1537_vm7, %v1569_v54, 0.0  ;;  %1632 = vst [vmem:[#allocation11 + $0xb0] sm:$0xff] %v1600_v56  ;;  %vm1545_vm15 = vcmp.ge.u32.totalorder %v1513_v8, 2147483648 }
 0x349   : > { %v2216_v43 = vpop.eup %2215  ;;  %v1572_v15 = vmul.f32 2.0, %v2214_v41  ;;  %v1602_v27 = vsel %vm1538_vm8, %v1570_v48, 0.0  ;;  %1633 = vst [vmem:[#allocation11 + $0xb8] sm:$0xff] %v1601_v1 }
 0x34a   : > { %v2218_v11 = vpop.eup %2217  ;;  %v1573_v19 = vmul.f32 2.0, %v2216_v43  ;;  %v1603_v25 = vsel %vm1539_vm9, %v1571_v50, 0.0  ;;  %1634 = vst [vmem:[#allocation11 + $0xc0] sm:$0xff] %v1602_v27 }
 0x34b   : > { %v2220_v29 = vpop.eup %2219  ;;  %v1574_v9 = vmul.f32 2.0, %v2218_v11  ;;  %v1604_v32 = vsel %vm1540_vm10, %v1572_v15, 0.0  ;;  %1635 = vst [vmem:[#allocation11 + $0xc8] sm:$0xff] %v1603_v25 }
 0x34c   : > { %v2222_v34 = vpop.eup %2221  ;;  %v1575_v38 = vmul.f32 2.0, %v2220_v29  ;;  %v1605_v35 = vsel %vm1541_vm11, %v1573_v19, 0.0  ;;  %1636 = vst [vmem:[#allocation11 + $0xd0] sm:$0xff] %v1604_v32 }
 0x34d   : > { %v2224_v31 = vpop.eup %2223  ;;  %v1576_v51 = vmul.f32 2.0, %v2222_v34  ;;  %v1606_v37 = vsel %vm1542_vm12, %v1574_v9, 0.0  ;;  %1637 = vst [vmem:[#allocation11 + $0xd8] sm:$0xff] %v1605_v35 }
 0x34e   : > { %v1577_v18 = vmul.f32 2.0, %v2224_v31  ;;  %v1607_v58 = vsel %vm1543_vm13, %v1575_v38, 0.0  ;;  %1638 = vst [vmem:[#allocation11 + $0xe0] sm:$0xff] %v1606_v37 }
 0x34f   : > { %v1608_v14 = vsel %vm1544_vm14, %v1576_v51, 0.0  ;;  %1639 = vst [vmem:[#allocation11 + $0xe8] sm:$0xff] %v1607_v58 }
 0x350   : > { %v1609_v22 = vsel %vm1545_vm15, %v1577_v18, 0.0  ;;  %1640 = vst [vmem:[#allocation11 + $0xf0] sm:$0xff] %v1608_v14 }
 0x351   : > { %1641 = vst [vmem:[#allocation11 + $0xf8] sm:$0xff] %v1609_v22 }
 0x352 PF: > { %p2067_p2 = scmp.eq.s32.totalorder %s2506_s30, 1  ;;  %s2434_s12 = smov [#allocation11]  }
 0x353   : > { %s1650_s22 = sshll.u32 %s2434_s12, 4  ;;  %s1651_s22 = int_to_ptr.vmem [resolvable:$true] %s1650_s22 }
 0x354   : > { %s2333_s19 = scalar_lea.vmem %s1651_s22, 4096  ;;  %p2340_p11 = scmp.lt.s32.totalorder %s1651_s22, %s1651_s22 }
 0x355   : > { %p2334_p5 = scmp.ne.s32.totalorder %s1651_s22, %s2333_s19  ;;  %p2341_p4 = scmp.lt.s32.totalorder %s2333_s19, %s2333_s19 }
 0x357   : > { %p2335_p13 = pnand %p2334_p5, %p2067_p2  ;;  %p2342_p10 = por %p2341_p4, %p2340_p11 }
 0x359   : > { %p2336_p9 = pneg %p2335_p13 }
 0x35b   : > { %p2343_p0 = pnand %p2342_p10, %p2336_p9 }
 0x35d   : > { %2346 = shalt.err (!%p2343_p0)
}
 0x35e   : > { %s2435_s21 = smov 128   ;;  %s2436_s18 = smov 8  }
 0x35f   : > { %s3323_s11 = sld [smem:[#allocation23_spill]] }
 0x365   : > { %2045 = dma.vmem_to_hbm [thread:$0]  (%p2067_p2), %s1651_s22, 4096, %s3323_s11, [#allocation5], %s2435_s21, %s2435_s21, %s2436_s18  }
 0x366   : > { %2398 = dma.done.wait (%p2067_p2), [#allocation5], 4096  }
 0x367   : > { %2400 = vsyncadd (%p2067_p2), [#allocation5], 4294963200 }
 0x368 PF: > { %s3324_s2 = sld [smem:[#allocation17_spill]]  ;;  %s3326_s24 = smov %s2407_s25 }
 0x369   : > { %s3325_s15 = sld [smem:[#allocation18_spill]]  ;;  %s3327_s25 = smov %s2411_s26 }
 0x36a   : > { %s3328_s26 = smov %s2596_s0  ;;  %s3329_s27 = smov %s2419_s28 }
 0x36e   : > { %s25_s29 = sadd.s32 1, %s3324_s2  }
 0x36f   : > { %p22_p8 = scmp.ge.s32.totalorder %s25_s29, 4   ;;  %s3330_s28 = smov %s3325_s15 }
 0x371   :  { %24 = sbr.rel (!%p22_p8) target bundleno = 14 (0xe), region = 126 }
 0x376   :  { %1666 = vsyncpa [#allocation4], 1 }
 0x377   :  { %1668 = vsyncpa [#allocation4 + $0x1], 1 }
 0x378   :  { %1669 = vsyncpa [#allocation7], 1 }
 0x379   :  { %1671 = vsyncpa [#allocation7 + $0x1], 1 }
 0x37a   :  { %1672 = vsyncpa [#allocation10], 1 }
 0x37b   :  { %1673 = vsyncpa [#allocation5], 1 }
 0x37c   :  { %1675 = vsyncpa [#allocation5 + $0x1], 1 }

</bundles_post_ra>
